<compile_context>
chip_gen: v7x
topology: tpu7x:2x2x1
jax: 0.10.0
libtpu: 0.0.40
codegen_flags: <defaults>
</compile_context>

<pallas_src>
import functools

import numpy as np
import jax
import jax.numpy as jnp
from jax import lax
from jax.experimental import pallas as pl
from jax.experimental.pallas import tpu as pltpu


# ----------------------------------------------------------------------------
# Pallas kernel: all bins fused (conv + GroupNorm + ReLU + bilinear upsample)
# ----------------------------------------------------------------------------
def ppm_fused_kernel(xs_ref, w_ref, b_ref, gamma_ref, beta_ref, mask_ref,
                     g_ref, gt_ref, cinv_ref, m_ref, o_ref):
    # xs_ref   : (1, Ppad, Cin)  bf16   stacked pooled inputs of all bins
    # w_ref    : (Cin, C)        bf16   comp-folded conv weights, C = n_bins*rd
    # b_ref, gamma_ref, beta_ref : (1, C) f32
    # mask_ref : (Ppad, C)       f32    block-diagonal validity mask
    # g_ref    : (C, NG) f32, gt_ref : (NG, C) f32, cinv_ref : (1, NG) f32
    # m_ref    : (hw_tile, Ppad) bf16   block-structured interpolation matrix
    # o_ref    : (1, hw_tile, C) f32    lane-dense output tile
    x = xs_ref[0]
    mask = mask_ref[...]

    # 1x1 conv (comp folded in), bf16 operands, f32 accumulate on the MXU.
    y = jnp.dot(x, w_ref[...], preferred_element_type=jnp.float32) + b_ref[...]

    # GroupNorm statistics over valid (row, channel-block) entries only.
    ym = y * mask
    stats = jnp.concatenate(
        [jnp.sum(ym, axis=0, keepdims=True),
         jnp.sum(ym * ym, axis=0, keepdims=True)], axis=0)             # (2, C)
    gstats = jnp.dot(stats, g_ref[...],
                     preferred_element_type=jnp.float32) * cinv_ref[...]  # (2, NG)
    gmean = gstats[0:1]
    gvar = jnp.maximum(gstats[1:2] - gmean * gmean, 0.0)   # clamp E[x^2]-E[x]^2
    mv = jnp.dot(jnp.concatenate([gmean, gvar], axis=0), gt_ref[...],
                 preferred_element_type=jnp.float32)                    # (2, C)

    # Fused GN affine (single scale/shift) + ReLU, then re-mask off-diag junk.
    a = gamma_ref[...] * lax.rsqrt(mv[1:2] + 1e-5)
    c = beta_ref[...] - mv[0:1] * a
    yact = jnp.maximum(y * a + c, 0.0) * mask

    # Bilinear upsample of all bins at once: (hw_tile, Ppad) @ (Ppad, C).
    o_ref[0] = jnp.dot(m_ref[...], yact.astype(jnp.bfloat16),
                       preferred_element_type=jnp.float32)


# ----------------------------------------------------------------------------
# Host-side helpers (pooling / interpolation-matrix construction)
# ----------------------------------------------------------------------------
def avg_pool_nhwc(x, k, stride, pad):
    """AvgPool2d with count_include_pad=False semantics on NHWC (as in spec)."""
    dims = (1, k, k, 1)
    strides = (1, stride, stride, 1)
    padding = ((0, 0), (pad, pad), (pad, pad), (0, 0))
    sums = lax.reduce_window(x, 0.0, lax.add, dims, strides, padding)
    ones = jnp.ones((1,) + x.shape[1:3] + (1,), x.dtype)
    cnts = lax.reduce_window(ones, 0.0, lax.add, dims, strides, padding)
    return sums / cnts


def bilinear_matrix(out_size, in_size):
    """PyTorch F.interpolate(mode='bilinear', align_corners=False) weights."""
    A = np.zeros((out_size, in_size), dtype=np.float32)
    scale = in_size / out_size
    for i in range(out_size):
        src = (i + 0.5) * scale - 0.5
        if src < 0.0:
            src = 0.0
        i0 = int(np.floor(src))
        i1 = min(i0 + 1, in_size - 1)
        w1 = src - i0
        A[i, i0] += 1.0 - w1
        A[i, i1] += w1
    return A


# ----------------------------------------------------------------------------
# Forward pass (jit-ed wrapper around the fused Pallas kernel)
# ----------------------------------------------------------------------------
@functools.partial(jax.jit, static_argnames=("bins",))
def ppm_basic_forward(x_nchw, params, bins):
    B, Cin, H, W = x_nchw.shape
    n_bins = len(bins)
    rd = params["ppm_w"][0].shape[1]
    ng_per_bin = 16
    gs = rd // ng_per_bin
    C = n_bins * rd
    NG = n_bins * ng_per_bin
    HW = H * W

    # --- pool the raw input per bin and stack the pooled rows ---------------
    x_nhwc = jnp.transpose(x_nchw, (0, 2, 3, 1))
    pieces, pinfo = [], []
    for bn in bins:
        pad = (bn - 1) // 2
        pooled = avg_pool_nhwc(x_nhwc, bn, bn, pad)
        _, Hp, Wp, _ = pooled.shape
        pinfo.append((Hp, Wp))
        pieces.append(pooled.reshape(B, Hp * Wp, Cin))
    Ptot = sum(hp * wp for hp, wp in pinfo)
    Ppad = ((Ptot + 127) // 128) * 128           # MXU-friendly K for upsample
    xs = jnp.concatenate(pieces, axis=1)
    xs = jnp.pad(xs, ((0, 0), (0, Ppad - Ptot), (0, 0))).astype(jnp.bfloat16)

    # --- fold comp into each bin's conv (commutes with the avg pool) --------
    Wc, bc = params["comp_w"], params["comp_b"]
    w_big = jnp.concatenate([Wc @ w for w in params["ppm_w"]], axis=1)       # (Cin, C)
    b_big = jnp.concatenate([bc @ w + b for w, b in
                             zip(params["ppm_w"], params["ppm_b"])])         # (C,)
    gamma_big = jnp.concatenate(params["gn_g"])
    beta_big = jnp.concatenate(params["gn_b"])

    # --- trace-time constants: validity mask, group maps, interp matrix -----
    mask_np = np.zeros((Ppad, C), np.float32)
    m_np = np.zeros((HW, Ppad), np.float32)
    g_np = np.zeros((C, NG), np.float32)
    cnt_inv_np = np.zeros((1, NG), np.float32)
    off = 0
    for i, (hp, wp) in enumerate(pinfo):
        p = hp * wp
        mask_np[off:off + p, i * rd:(i + 1) * rd] = 1.0
        m_np[:, off:off + p] = np.kron(bilinear_matrix(H, hp),
                                       bilinear_matrix(W, wp))
        for ch in range(rd):
            g_np[i * rd + ch, i * ng_per_bin + ch // gs] = 1.0
        cnt_inv_np[0, i * ng_per_bin:(i + 1) * ng_per_bin] = 1.0 / (p * gs)
        off += p

    mask = jnp.asarray(mask_np)
    g_mat = jnp.asarray(g_np)
    gt_mat = jnp.asarray(g_np.T)
    cnt_inv = jnp.asarray(cnt_inv_np)
    m_all = jnp.asarray(m_np, dtype=jnp.bfloat16)

    # --- HW tiling: pipeline the lane-dense output writeback ----------------
    hw_tile = 256 if (HW > 512 and HW % 256 == 0) else HW
    n_hw = HW // hw_tile

    out = pl.pallas_call(
        ppm_fused_kernel,
        out_shape=jax.ShapeDtypeStruct((B, HW, C), jnp.float32),
        grid=(B, n_hw),
        in_specs=[
            pl.BlockSpec((1, Ppad, Cin), lambda b, t: (b, 0, 0)),
            pl.BlockSpec((Cin, C), lambda b, t: (0, 0)),
            pl.BlockSpec((1, C), lambda b, t: (0, 0)),
            pl.BlockSpec((1, C), lambda b, t: (0, 0)),
            pl.BlockSpec((1, C), lambda b, t: (0, 0)),
            pl.BlockSpec((Ppad, C), lambda b, t: (0, 0)),
            pl.BlockSpec((C, NG), lambda b, t: (0, 0)),
            pl.BlockSpec((NG, C), lambda b, t: (0, 0)),
            pl.BlockSpec((1, NG), lambda b, t: (0, 0)),
            pl.BlockSpec((hw_tile, Ppad), lambda b, t: (t, 0)),
        ],
        out_specs=pl.BlockSpec((1, hw_tile, C), lambda b, t: (b, t, 0)),
        compiler_params=pltpu.CompilerParams(
            dimension_semantics=("parallel", "parallel")),
    )(xs, w_big.astype(jnp.bfloat16), b_big.reshape(1, C),
      gamma_big.reshape(1, C), beta_big.reshape(1, C),
      mask, g_mat, gt_mat, cnt_inv, m_all)

    branches = jnp.transpose(out.reshape(B, H, W, C), (0, 3, 1, 2))
    return jnp.concatenate([x_nchw, branches], axis=1)


# ----------------------------------------------------------------------------
# Pure-JAX reference (module semantics, f32) for a correctness check
# ----------------------------------------------------------------------------
def ppm_basic_reference(x_nchw, params, bins):
    B, Cin, H, W = x_nchw.shape
    x_nhwc = jnp.transpose(x_nchw, (0, 2, 3, 1))
    comp = jnp.einsum("bhwc,cm->bhwm", x_nhwc, params["comp_w"]) + params["comp_b"]
    outs = [x_nchw]
    for i, bn in enumerate(bins):
        pad = (bn - 1) // 2
        pooled = avg_pool_nhwc(comp, bn, bn, pad)
        _, Hp, Wp, _ = pooled.shape
        y = jnp.einsum("bhwm,mr->bhwr", pooled, params["ppm_w"][i]) + params["ppm_b"][i]
        rd = y.shape[-1]
        yg = y.reshape(B, Hp * Wp, 16, rd // 16)
        mean = yg.mean(axis=(1, 3), keepdims=True)
        var = ((yg - mean) ** 2).mean(axis=(1, 3), keepdims=True)
        yn = ((yg - mean) / jnp.sqrt(var + 1e-5)).reshape(B, Hp, Wp, rd)
        ya = jnp.maximum(yn * params["gn_g"][i] + params["gn_b"][i], 0.0)
        Ah = jnp.asarray(bilinear_matrix(H, Hp))
        Aw = jnp.asarray(bilinear_matrix(W, Wp))
        up = jnp.einsum("hp,bpqr->bhqr", Ah, ya)
        up = jnp.einsum("wq,bhqr->bhwr", Aw, up)
        outs.append(jnp.transpose(up, (0, 3, 1, 2)))
    return jnp.concatenate(outs, axis=1)


# ----------------------------------------------------------------------------
# Deterministic parameter construction
# ----------------------------------------------------------------------------
def make_params(in_dim, mid, rd, bins, key):
    assert rd % 16 == 0
    keys = jax.random.split(key, 2 + 4 * len(bins))
    params = {
        "comp_w": 0.1 * jax.random.normal(keys[0], (in_dim, mid), jnp.float32),
        "comp_b": 0.1 * jax.random.normal(keys[1], (mid,), jnp.float32),
        "ppm_w": [], "ppm_b": [], "gn_g": [], "gn_b": [],
    }
    for i in range(len(bins)):
        k0, k1, k2, k3 = keys[2 + 4 * i: 2 + 4 * (i + 1)]
        params["ppm_w"].append(0.1 * jax.random.normal(k0, (mid, rd), jnp.float32))
        params["ppm_b"].append(0.1 * jax.random.normal(k1, (rd,), jnp.float32))
        params["gn_g"].append(1.0 + 0.05 * jax.random.normal(k2, (rd,), jnp.float32))
        params["gn_b"].append(0.05 * jax.random.normal(k3, (rd,), jnp.float32))
    return params


# ----------------------------------------------------------------------------
if __name__ == "__main__":
    B, in_dim, H, W = 2, 8, 16, 16
    mid, reduction_dim = 32, 32
    bins = (1, 2, 3, 6)

    root = jax.random.PRNGKey(0)
    kx, kp = jax.random.split(root)
    x = jax.random.normal(kx, (B, in_dim, H, W), jnp.float32)
    params = make_params(in_dim, mid, reduction_dim, bins, kp)

    out = ppm_basic_forward(x, params, bins=bins)
    out = jax.block_until_ready(out)

    expected_channels = in_dim + len(bins) * reduction_dim
    assert out.shape == (B, expected_channels, H, W), out.shape
    assert bool(jnp.all(jnp.isfinite(out)))

    # Loose correctness check vs. f32 reference (kernel uses bf16 MXU inputs).
    ref = ppm_basic_reference(x, params, bins)
    err = float(jnp.max(jnp.abs(out - ref)))
    assert err < 0.15, f"max abs err vs reference = {err}"

    print("KERNEL_OK")
</pallas_src>

<mosaic_0001>
module attributes {stable_mosaic.version = 11 : i64} {
  func.func @ppm_fused_kernel(%arg0: i32, %arg1: i32, %arg2: memref<1x384x8xbf16, #tpu.memory_space<vmem>>, %arg3: memref<8x128xbf16, #tpu.memory_space<vmem>>, %arg4: memref<1x128xf32, #tpu.memory_space<vmem>>, %arg5: memref<1x128xf32, #tpu.memory_space<vmem>>, %arg6: memref<1x128xf32, #tpu.memory_space<vmem>>, %arg7: memref<384x128xf32, #tpu.memory_space<vmem>>, %arg8: memref<128x64xf32, #tpu.memory_space<vmem>>, %arg9: memref<64x128xf32, #tpu.memory_space<vmem>>, %arg10: memref<1x64xf32, #tpu.memory_space<vmem>>, %arg11: memref<256x384xbf16, #tpu.memory_space<vmem>>, %arg12: memref<1x256x128xf32, #tpu.memory_space<vmem>>) attributes {dimension_semantics = [#tpu.dimension_semantics<parallel>, #tpu.dimension_semantics<parallel>], iteration_bounds = array<i64: 2, 1>, scalar_prefetch = 0 : i64, scratch_operands = 0 : i64, tpu.core_type = #tpu.core_type<tc>, window_params = [{transform_indices = @transform_0, window_bounds = array<i64: 1, 384, 8>}, {pipeline_mode = #tpu.pipeline_mode<synchronous>, transform_indices = @transform_1, window_bounds = array<i64: 8, 128>}, {pipeline_mode = #tpu.pipeline_mode<synchronous>, transform_indices = @transform_2, window_bounds = array<i64: 1, 128>}, {pipeline_mode = #tpu.pipeline_mode<synchronous>, transform_indices = @transform_3, window_bounds = array<i64: 1, 128>}, {pipeline_mode = #tpu.pipeline_mode<synchronous>, transform_indices = @transform_4, window_bounds = array<i64: 1, 128>}, {pipeline_mode = #tpu.pipeline_mode<synchronous>, transform_indices = @transform_5, window_bounds = array<i64: 384, 128>}, {pipeline_mode = #tpu.pipeline_mode<synchronous>, transform_indices = @transform_6, window_bounds = array<i64: 128, 64>}, {pipeline_mode = #tpu.pipeline_mode<synchronous>, transform_indices = @transform_7, window_bounds = array<i64: 64, 128>}, {pipeline_mode = #tpu.pipeline_mode<synchronous>, transform_indices = @transform_8, window_bounds = array<i64: 1, 64>}, {transform_indices = @transform_9, window_bounds = array<i64: 256, 384>}, {transform_indices = @transform_10, window_bounds = array<i64: 1, 256, 128>}]} {
    %c0 = arith.constant 0 : index
    %c0_0 = arith.constant 0 : index
    %c0_1 = arith.constant 0 : index
    %0 = vector.load %arg2[%c0, %c0_0, %c0_1] : memref<1x384x8xbf16, #tpu.memory_space<vmem>>, vector<1x384x8xbf16>
    %1 = vector.shape_cast %0 : vector<1x384x8xbf16> to vector<384x8xbf16>
    %c0_2 = arith.constant 0 : index
    %c0_3 = arith.constant 0 : index
    %2 = vector.load %arg7[%c0_2, %c0_3] : memref<384x128xf32, #tpu.memory_space<vmem>>, vector<384x128xf32>
    %c0_4 = arith.constant 0 : index
    %c0_5 = arith.constant 0 : index
    %3 = vector.load %arg3[%c0_4, %c0_5] : memref<8x128xbf16, #tpu.memory_space<vmem>>, vector<8x128xbf16>
    %cst = arith.constant dense<0.000000e+00> : vector<384x128xf32>
    %4 = tpu.matmul %1, %3, %cst {dimension_numbers = #tpu.dot_dimension_numbers<[1], [0], [0], [1], [0, 0, 1, 1], [], []>} : vector<384x8xbf16>, vector<8x128xbf16>, vector<384x128xf32> -> vector<384x128xf32>
    %c0_6 = arith.constant 0 : index
    %c0_7 = arith.constant 0 : index
    %5 = vector.load %arg4[%c0_6, %c0_7] : memref<1x128xf32, #tpu.memory_space<vmem>>, vector<1x128xf32>
    %6 = vector.broadcast %5 : vector<1x128xf32> to vector<384x128xf32>
    %7 = arith.addf %4, %6 : vector<384x128xf32>
    %8 = arith.mulf %7, %2 : vector<384x128xf32>
    %cst_8 = arith.constant dense<0.000000e+00> : vector<128xf32>
    %9 = vector.multi_reduction <add>, %8, %cst_8 [0] : vector<384x128xf32> to vector<128xf32>
    %10 = vector.shape_cast %9 : vector<128xf32> to vector<1x128xf32>
    %11 = arith.mulf %8, %8 : vector<384x128xf32>
    %cst_9 = arith.constant dense<0.000000e+00> : vector<128xf32>
    %12 = vector.multi_reduction <add>, %11, %cst_9 [0] : vector<384x128xf32> to vector<128xf32>
    %13 = vector.shape_cast %12 : vector<128xf32> to vector<1x128xf32>
    %14 = tpu.concatenate %10, %13 in 0 : vector<1x128xf32>, vector<1x128xf32> -> vector<2x128xf32>
    %c0_10 = arith.constant 0 : index
    %c0_11 = arith.constant 0 : index
    %15 = vector.load %arg8[%c0_10, %c0_11] : memref<128x64xf32, #tpu.memory_space<vmem>>, vector<128x64xf32>
    %cst_12 = arith.constant dense<0.000000e+00> : vector<2x64xf32>
    %16 = tpu.matmul %14, %15, %cst_12 {dimension_numbers = #tpu.dot_dimension_numbers<[1], [0], [0], [1], [0, 0, 1, 1], [], []>} : vector<2x128xf32>, vector<128x64xf32>, vector<2x64xf32> -> vector<2x64xf32>
    %c0_13 = arith.constant 0 : index
    %c0_14 = arith.constant 0 : index
    %17 = vector.load %arg10[%c0_13, %c0_14] : memref<1x64xf32, #tpu.memory_space<vmem>>, vector<1x64xf32>
    %18 = vector.broadcast %17 : vector<1x64xf32> to vector<2x64xf32>
    %19 = arith.mulf %16, %18 : vector<2x64xf32>
    %20 = vector.extract_strided_slice %19 {offsets = [0, 0], sizes = [1, 64], strides = [1, 1]} : vector<2x64xf32> to vector<1x64xf32>
    %21 = vector.extract_strided_slice %19 {offsets = [1, 0], sizes = [1, 64], strides = [1, 1]} : vector<2x64xf32> to vector<1x64xf32>
    %22 = arith.mulf %20, %20 : vector<1x64xf32>
    %23 = arith.subf %21, %22 : vector<1x64xf32>
    %cst_15 = arith.constant 0.000000e+00 : f32
    %24 = vector.broadcast %cst_15 : f32 to vector<1x64xf32>
    %25 = arith.maximumf %23, %24 : vector<1x64xf32>
    %26 = tpu.concatenate %20, %25 in 0 : vector<1x64xf32>, vector<1x64xf32> -> vector<2x64xf32>
    %c0_16 = arith.constant 0 : index
    %c0_17 = arith.constant 0 : index
    %27 = vector.load %arg9[%c0_16, %c0_17] : memref<64x128xf32, #tpu.memory_space<vmem>>, vector<64x128xf32>
    %cst_18 = arith.constant dense<0.000000e+00> : vector<2x128xf32>
    %28 = tpu.matmul %26, %27, %cst_18 {dimension_numbers = #tpu.dot_dimension_numbers<[1], [0], [0], [1], [0, 0, 1, 1], [], []>} : vector<2x64xf32>, vector<64x128xf32>, vector<2x128xf32> -> vector<2x128xf32>
    %c0_19 = arith.constant 0 : index
    %c0_20 = arith.constant 0 : index
    %29 = vector.load %arg5[%c0_19, %c0_20] : memref<1x128xf32, #tpu.memory_space<vmem>>, vector<1x128xf32>
    %30 = vector.extract_strided_slice %28 {offsets = [1, 0], sizes = [1, 128], strides = [1, 1]} : vector<2x128xf32> to vector<1x128xf32>
    %cst_21 = arith.constant 9.99999974E-6 : f32
    %31 = vector.broadcast %cst_21 : f32 to vector<1x128xf32>
    %32 = arith.addf %30, %31 : vector<1x128xf32>
    %33 = math.rsqrt %32 : vector<1x128xf32>
    %34 = arith.mulf %29, %33 : vector<1x128xf32>
    %c0_22 = arith.constant 0 : index
    %c0_23 = arith.constant 0 : index
    %35 = vector.load %arg6[%c0_22, %c0_23] : memref<1x128xf32, #tpu.memory_space<vmem>>, vector<1x128xf32>
    %36 = vector.extract_strided_slice %28 {offsets = [0, 0], sizes = [1, 128], strides = [1, 1]} : vector<2x128xf32> to vector<1x128xf32>
    %37 = arith.mulf %36, %34 : vector<1x128xf32>
    %38 = arith.subf %35, %37 : vector<1x128xf32>
    %39 = vector.broadcast %34 : vector<1x128xf32> to vector<384x128xf32>
    %40 = arith.mulf %7, %39 : vector<384x128xf32>
    %41 = vector.broadcast %38 : vector<1x128xf32> to vector<384x128xf32>
    %42 = arith.addf %40, %41 : vector<384x128xf32>
    %cst_24 = arith.constant 0.000000e+00 : f32
    %43 = vector.broadcast %cst_24 : f32 to vector<384x128xf32>
    %44 = arith.maximumf %42, %43 : vector<384x128xf32>
    %45 = arith.mulf %44, %2 : vector<384x128xf32>
    %c0_25 = arith.constant 0 : index
    %c0_26 = arith.constant 0 : index
    %46 = vector.load %arg11[%c0_25, %c0_26] : memref<256x384xbf16, #tpu.memory_space<vmem>>, vector<256x384xbf16>
    %47 = arith.truncf %45 : vector<384x128xf32> to vector<384x128xbf16>
    %cst_27 = arith.constant dense<0.000000e+00> : vector<256x128xf32>
    %48 = tpu.matmul %46, %47, %cst_27 {dimension_numbers = #tpu.dot_dimension_numbers<[1], [0], [0], [1], [0, 0, 1, 1], [], []>} : vector<256x384xbf16>, vector<384x128xbf16>, vector<256x128xf32> -> vector<256x128xf32>
    %c0_28 = arith.constant 0 : index
    %c0_29 = arith.constant 0 : index
    %c0_30 = arith.constant 0 : index
    %49 = vector.load %arg12[%c0_28, %c0_29, %c0_30] : memref<1x256x128xf32, #tpu.memory_space<vmem>>, vector<1x256x128xf32>
    %50 = vector.shape_cast %49 : vector<1x256x128xf32> to vector<256x128xf32>
    %51 = vector.shape_cast %48 : vector<256x128xf32> to vector<1x256x128xf32>
    tpu.vector_store %arg12[%c0_28, %c0_29, %c0_30], %51 {strides = array<i32>} : memref<1x256x128xf32, #tpu.memory_space<vmem>>, vector<1x256x128xf32>,
    return
  }
  func.func @transform_0(%arg0: i32, %arg1: i32) -> (i32, i32, i32) {
    %c0_i32 = arith.constant 0 : i32
    %c0_i32_0 = arith.constant 0 : i32
    %c0_i32_1 = arith.constant 0 : i32
    return %arg0, %c0_i32, %c0_i32_0 : i32, i32, i32
  }
  func.func @transform_1(%arg0: i32, %arg1: i32) -> (i32, i32) {
    %c0_i32 = arith.constant 0 : i32
    %c0_i32_0 = arith.constant 0 : i32
    %c0_i32_1 = arith.constant 0 : i32
    return %c0_i32, %c0_i32_0 : i32, i32
  }
  func.func @transform_2(%arg0: i32, %arg1: i32) -> (i32, i32) {
    %c0_i32 = arith.constant 0 : i32
    %c0_i32_0 = arith.constant 0 : i32
    %c0_i32_1 = arith.constant 0 : i32
    return %c0_i32, %c0_i32_0 : i32, i32
  }
  func.func @transform_3(%arg0: i32, %arg1: i32) -> (i32, i32) {
    %c0_i32 = arith.constant 0 : i32
    %c0_i32_0 = arith.constant 0 : i32
    %c0_i32_1 = arith.constant 0 : i32
    return %c0_i32, %c0_i32_0 : i32, i32
  }
  func.func @transform_4(%arg0: i32, %arg1: i32) -> (i32, i32) {
    %c0_i32 = arith.constant 0 : i32
    %c0_i32_0 = arith.constant 0 : i32
    %c0_i32_1 = arith.constant 0 : i32
    return %c0_i32, %c0_i32_0 : i32, i32
  }
  func.func @transform_5(%arg0: i32, %arg1: i32) -> (i32, i32) {
    %c0_i32 = arith.constant 0 : i32
    %c0_i32_0 = arith.constant 0 : i32
    %c0_i32_1 = arith.constant 0 : i32
    return %c0_i32, %c0_i32_0 : i32, i32
  }
  func.func @transform_6(%arg0: i32, %arg1: i32) -> (i32, i32) {
    %c0_i32 = arith.constant 0 : i32
    %c0_i32_0 = arith.constant 0 : i32
    %c0_i32_1 = arith.constant 0 : i32
    return %c0_i32, %c0_i32_0 : i32, i32
  }
  func.func @transform_7(%arg0: i32, %arg1: i32) -> (i32, i32) {
    %c0_i32 = arith.constant 0 : i32
    %c0_i32_0 = arith.constant 0 : i32
    %c0_i32_1 = arith.constant 0 : i32
    return %c0_i32, %c0_i32_0 : i32, i32
  }
  func.func @transform_8(%arg0: i32, %arg1: i32) -> (i32, i32) {
    %c0_i32 = arith.constant 0 : i32
    %c0_i32_0 = arith.constant 0 : i32
    %c0_i32_1 = arith.constant 0 : i32
    return %c0_i32, %c0_i32_0 : i32, i32
  }
  func.func @transform_9(%arg0: i32, %arg1: i32) -> (i32, i32) {
    %c0_i32 = arith.constant 0 : i32
    %c0_i32_0 = arith.constant 0 : i32
    return %arg1, %c0_i32 : i32, i32
  }
  func.func @transform_10(%arg0: i32, %arg1: i32) -> (i32, i32, i32) {
    %c0_i32 = arith.constant 0 : i32
    %c0_i32_0 = arith.constant 0 : i32
    return %arg0, %arg1, %c0_i32 : i32, i32, i32
  }
}

</mosaic_0001>

<bundles_post_ra>
// kernel: ppm_basic_forward.1
= control target key start
LH: loop header
LB: loop body
LE: loop exit
PB: predicated region body
PF: predicated region fallthrough
CT: control target
= control target key end

     0   :  { %s3050_s13 = smov 0   ;;  %s3052_s14 = smov 0   ;;  %s4210_s0 = inlined_call_operand.vmem [shape: bf16[2,384,8], index: 0, kind: input, shape index: {}]   ;;  %s4211_s1 = inlined_call_operand.vmem [shape: bf16[8,128], index: 1, kind: input, shape index: {}]   ;;  %s4212_s2 = inlined_call_operand.vmem [shape: f32[1,128], index: 2, kind: input, shape index: {}]   ;;  %s4213_s3 = inlined_call_operand.vmem [shape: f32[1,128], index: 3, kind: input, shape index: {}]   ;;  %s4214_s4 = inlined_call_operand.vmem [shape: f32[1,128], index: 4, kind: input, shape index: {}]   ;;  %s4215_s5 = inlined_call_operand.vmem [shape: f32[384,128], index: 5, kind: input, shape index: {}]   ;;  %s4216_s6 = inlined_call_operand.vmem [shape: f32[128,64], index: 6, kind: input, shape index: {}]   ;;  %s4217_s7 = inlined_call_operand.vmem [shape: f32[64,128], index: 7, kind: input, shape index: {}]   ;;  %s4218_s8 = inlined_call_operand.vmem [shape: f32[1,64], index: 8, kind: input, shape index: {}]   ;;  %s4219_s9 = inlined_call_operand.vmem [shape: bf16[256,384], index: 9, kind: input, shape index: {}]   ;;  %s4220_s10 = inlined_call_operand.vmem [shape: f32[2,256,128], index: 10, kind: output, shape index: {}]  }
   0x1   :  { %s3054_s15 = smov 0  }
   0x2 LB: > { %s32_s16 = sadd.s32 1, %s2985_s14  ;;  %p2349_p0 = scmp.ge.s32.totalorder %s2989_s15, 1  ;;  %s2989_s15 = sphi %s3054_s15, %s20_s15   ;;  %s2985_s14 = sphi %s3052_s14, %s4365_s14   ;;  %s2981_s13 = sphi %s3050_s13, %s4364_s13  }
   0x3   : > { %p34_p1 = scmp.ge.s32.totalorder %s32_s16, 2  ;;  %p338_p2 = scmp.lt.s32.totalorder %s2989_s15, 3 }
   0x5   : > { %s4367_s16 = smov (%p34_p1, %s32_s16), 0  ;;  %p339_p3 = pnand %p2349_p0, %p338_p2 }
   0x7   : > { %342 = sbr.rel (%p339_p3) target bundleno = 1215 (0x4bf), region = 60 }
   0xe   : > { %v505_v0 = vld [vmem:[%s4211_s1] sm:$0xf]  ;;  %vm706_vm0 = vcmask 1043456   ;;  %p386_p4 = scmp.lt.s32.totalorder %s2981_s13, 1  ;;  %vm633_vm1 = vcmask 64512   ;;  %v1140_v27 = vld [vmem:[%s4216_s6 + $0x8] sm:$0xff] }
   0xf   : > { %2832 = vmatprep.subr.msk.bf16.mxu0 %vm706_vm0, %v505_v0  ;;  %v708_v1 = vsel %vm706_vm0, %v505_v0, 0  ;;  %2833 = vmatprep.subr.msk.bf16.mxu1 %vm706_vm0, %v505_v0  ;;  %v1139_v26 = vld [vmem:[%s4216_s6] sm:$0xff]  ;;  %v4221_v28 = vmov 0.0|0.0   ;;  %v1141_v30 = vld [vmem:[%s4216_s6 + $0x10] sm:$0xff]  ;;  %v1142_v31 = vld [vmem:[%s4216_s6 + $0x18] sm:$0xff]  ;;  %vm2992_vm2 = vmmov 0  }
  0x10   : > { %2643 = vmatpush3.bf16.msra.mxu0 %v708_v1  ;;  %s4369_s13 = smov (!%p386_p4, %s2981_s13), 1  ;;  %2831 = vmatpush3.bf16.msra.mxu1 %v708_v1  ;;  %v2795_v29 = vpack.c.bf16 %v1140_v27, %v1139_v26  ;;  %v2798_v32 = vpack.c.bf16 %v1142_v31, %v1141_v30  ;;  %v1143_v33 = vld [vmem:[%s4216_s6 + $0x20] sm:$0xff]  ;;  %v1144_v34 = vld [vmem:[%s4216_s6 + $0x28] sm:$0xff]  ;;  %v1145_v36 = vld [vmem:[%s4216_s6 + $0x30] sm:$0xff]  ;;  %v2993_v50 = vmov 0.0   ;;  %vm1137_vm3 = vcmask 1040384  }
  0x11   : > { %s2834_s19 = smul.u32 192, %s4369_s13  ;;  %2794 = vmatprep.subr.bf16.mxu0 %v4221_v28  ;;  %2818 = vmatprep.subr.bf16.mxu1 %v4221_v28  ;;  %v2801_v35 = vpack.c.bf16 %v1144_v34, %v1143_v33  ;;  %v1146_v37 = vld [vmem:[%s4216_s6 + $0x38] sm:$0xff]  ;;  %v1147_v39 = vld [vmem:[%s4216_s6 + $0x40] sm:$0xff]  ;;  %v1148_v40 = vld [vmem:[%s4216_s6 + $0x48] sm:$0xff]  ;;  %vm1248_vm4 = vcmask 523264   ;;  %s2454_s27 = sshll.u32 %s4369_s13, 8 }
  0x12   : > { %v2804_v38 = vpack.c.bf16 %v1146_v37, %v1145_v36  ;;  %v2807_v41 = vpack.c.bf16 %v1148_v40, %v1147_v39  ;;  %v1149_v42 = vld [vmem:[%s4216_s6 + $0x50] sm:$0xff]  ;;  %v1150_v43 = vld [vmem:[%s4216_s6 + $0x58] sm:$0xff]  ;;  %v1151_v45 = vld [vmem:[%s4216_s6 + $0x60] sm:$0xff]  ;;  %s4125_s30 = scalar_lea.vmem %s4220_s10, %s2454_s27 }
  0x13   : > { %s3077_s22 = scalar_lea.vmem %s4210_s0, %s2834_s19  ;;  %v2810_v44 = vpack.c.bf16 %v1150_v43, %v1149_v42  ;;  %v1152_v46 = vld [vmem:[%s4216_s6 + $0x68] sm:$0xff]  ;;  %v1153_v47 = vld [vmem:[%s4216_s6 + $0x70] sm:$0xff]  ;;  %v1154_v49 = vld [vmem:[%s4216_s6 + $0x78] sm:$0xff] }
  0x14   : > { %v2863_v2 = vld [vmem:[%s3077_s22] sm:$0xff]   ;;  %v2864_v3 = vld [vmem:[%s3077_s22 + $0x8] sm:$0xff]   ;;  %v2865_v4 = vld [vmem:[%s3077_s22 + $0x10] sm:$0xff]   ;;  %v2813_v48 = vpack.c.bf16 %v1152_v46, %v1151_v45  ;;  %v2816_v51 = vpack.c.bf16 %v1154_v49, %v1153_v47 }
  0x15   : > { %2644 = vmatprep.mubr.msk.bf16.mxu0 %vm633_vm1, %v2863_v2  ;;  %v2866_v5 = vld [vmem:[%s3077_s22 + $0x18] sm:$0xff]   ;;  %v2867_v6 = vld [vmem:[%s3077_s22 + $0x20] sm:$0xff]   ;;  %v2868_v7 = vld [vmem:[%s3077_s22 + $0x28] sm:$0xff]  }
  0x16   : > { %2645 = vmatmul.mubr.msk.bf16.vlgmr.msra.gmra.mrb[0].mxu0 %vm633_vm1, %v2864_v3  ;;  %v2869_v8 = vld [vmem:[%s3077_s22 + $0x30] sm:$0xff]   ;;  %v2883_v9 = vld [vmem:[%s3077_s22 + $0xa0] sm:$0xff]   ;;  %v2870_v10 = vld [vmem:[%s3077_s22 + $0x38] sm:$0xff]  }
  0x17   : > { %2648 = vmatprep.mubr.msk.bf16.mxu0 %vm633_vm1, %v2865_v4  ;;  %v2884_v11 = vld [vmem:[%s3077_s22 + $0xa8] sm:$0xff]   ;;  %2684 = vmatprep.mubr.msk.bf16.mxu1 %vm633_vm1, %v2883_v9  ;;  %v2885_v12 = vld [vmem:[%s3077_s22 + $0xb0] sm:$0xff]   ;;  %v2871_v13 = vld [vmem:[%s3077_s22 + $0x40] sm:$0xff]  }
  0x18   : > { %2685 = vmatmul.mubr.msk.bf16.vlgmr.msra.gmra.mrb[0].mxu1 %vm633_vm1, %v2884_v11  ;;  %v2886_v14 = vld [vmem:[%s3077_s22 + $0xb8] sm:$0xff]   ;;  %v2872_v15 = vld [vmem:[%s3077_s22 + $0x48] sm:$0xff]   ;;  %v2873_v16 = vld [vmem:[%s3077_s22 + $0x50] sm:$0xff]   ;;  %2796 = vmatpush3.bf16.msra.mxu0 %v2795_v29 }
  0x19   : > { %2688 = vmatprep.mubr.msk.bf16.mxu1 %vm633_vm1, %v2885_v12  ;;  %v2874_v17 = vld [vmem:[%s3077_s22 + $0x58] sm:$0xff]   ;;  %v2875_v18 = vld [vmem:[%s3077_s22 + $0x60] sm:$0xff]   ;;  %v2876_v19 = vld [vmem:[%s3077_s22 + $0x68] sm:$0xff]   ;;  %2797 = vmatprep.subr.bf16.mxu0 %v4221_v28 }
  0x1a   : > { %v2877_v20 = vld [vmem:[%s3077_s22 + $0x70] sm:$0xff]   ;;  %v2878_v21 = vld [vmem:[%s3077_s22 + $0x78] sm:$0xff]   ;;  %v2879_v22 = vld [vmem:[%s3077_s22 + $0x80] sm:$0xff]  }
  0x1b   : > { %v2880_v23 = vld [vmem:[%s3077_s22 + $0x88] sm:$0xff]   ;;  %v2881_v24 = vld [vmem:[%s3077_s22 + $0x90] sm:$0xff]   ;;  %v2882_v25 = vld [vmem:[%s3077_s22 + $0x98] sm:$0xff]  }
  0x1c   : > { %2799 = vmatpush3.bf16.msra.mxu0 %v2798_v32  ;;  %v1240_v52 = vld [vmem:[%s4217_s7] sm:$0xff]  ;;  %v1241_v53 = vld [vmem:[%s4217_s7 + $0x8] sm:$0xff]  ;;  %v459_v62 = vld [vmem:[%s4215_s5 + $0x10] sm:$0xff] }
  0x1d   : > { %2800 = vmatprep.subr.bf16.mxu0 %v4221_v28  ;;  %v2819_v54 = vpack.c.bf16 %v1241_v53, %v1240_v52  ;;  %v3194_v55 = vld [vmem:[%s4212_s2] ss:$0 sm:$0xff]  ;;  %v3216_v0 = vld [vmem:[%s4215_s5 + $0x8] sm:$0xff]  ;;  %v460_v3 = vld [vmem:[%s4215_s5 + $0x18] sm:$0xff] }
  0x1e   : > { %2649 = vmatmul.mubr.msk.bf16.gmra.mrb[4].mxu0 %vm633_vm1, %v2866_v5  ;;  %v3199_v57 = vld [vmem:[%s4215_s5] sm:$0xff]  ;;  %4268 = vst [vmem:[#allocation3_spill] sm:$0xff] %v3216_v0  ;;  %v464_v29 = vld [vmem:[%s4215_s5 + $0x38] sm:$0xff]  ;;  %v467_v47 = vld [vmem:[%s4215_s5 + $0x50] sm:$0xff] }
  0x1f   : > { %2652 = vmatprep.mubr.msk.bf16.mxu0 %vm633_vm1, %v2867_v6  ;;  %2820 = vmatpush3.bf16.msra.mxu1 %v2819_v54  ;;  %4267 = vst [vmem:[#allocation2_spill] sm:$0xff] %v3199_v57  ;;  %v465_v42 = vld [vmem:[%s4215_s5 + $0x40] sm:$0xff]  ;;  %v466_v52 = vld [vmem:[%s4215_s5 + $0x48] sm:$0xff] }
  0x20   : > { %2689 = vmatmul.mubr.msk.bf16.gmra.mrb[4].mxu1 %vm633_vm1, %v2886_v14  ;;  %2802 = vmatpush3.bf16.msra.mxu0 %v2801_v35 }
  0x21   : > { %2803 = vmatprep.subr.bf16.mxu0 %v4221_v28  ;;  %2743 = vmatprep.mubr.msk.f32.mxu1 %vm2992_vm2, %v2993_v50 }
  0x22   : > { %2821 = vmatprep.subr.bf16.mxu1 %v4221_v28 }
  0x24   : > { %2805 = vmatpush3.bf16.msra.mxu0 %v2804_v38 }
  0x25   : > { %2806 = vmatprep.subr.bf16.mxu0 %v4221_v28 }
  0x26   : > { %2653 = vmatmul.mubr.msk.bf16.gmra.mrb[8].mxu0 %vm633_vm1, %v2868_v7 }
  0x27   : > { %2656 = vmatprep.mubr.msk.bf16.mxu0 %vm633_vm1, %v2869_v8 }
  0x28   : > { %2808 = vmatpush3.bf16.msra.mxu0 %v2807_v41 }
  0x29   : > { %2809 = vmatprep.subr.bf16.mxu0 %v4221_v28 }
  0x2c   : > { %2811 = vmatpush3.bf16.msra.mxu0 %v2810_v44 }
  0x2d   : > { %2812 = vmatprep.subr.bf16.mxu0 %v4221_v28 }
  0x2e   : > { %2657 = vmatmul.mubr.msk.bf16.gmra.mrb[12].mxu0 %vm633_vm1, %v2870_v10 }
  0x2f   : > { %2660 = vmatprep.mubr.msk.bf16.mxu0 %vm633_vm1, %v2871_v13  ;;  %v461_v13 = vld [vmem:[%s4215_s5 + $0x20] sm:$0xff] }
  0x30   : > { %2814 = vmatpush3.bf16.msra.mxu0 %v2813_v48 }
  0x31   : > { %2815 = vmatprep.subr.bf16.mxu0 %v4221_v28 }
  0x34   : > { %2817 = vmatpush3.bf16.msra.mxu0 %v2816_v51 }
  0x36   : > { %2661 = vmatmul.mubr.msk.bf16.gmra.mrb[16].mxu0 %vm633_vm1, %v2872_v15 }
  0x37   : > { %2664 = vmatprep.mubr.msk.bf16.mxu0 %vm633_vm1, %v2873_v16 }
  0x3e   : > { %2665 = vmatmul.mubr.msk.bf16.gmra.mrb[20].mxu0 %vm633_vm1, %v2874_v17 }
  0x3f   : > { %2668 = vmatprep.mubr.msk.bf16.mxu0 %vm633_vm1, %v2875_v18  ;;  %v463_v18 = vld [vmem:[%s4215_s5 + $0x30] sm:$0xff] }
  0x46   : > { %2669 = vmatmul.mubr.msk.bf16.gmra.mrb[24].mxu0 %vm633_vm1, %v2876_v19 }
  0x47   : > { %2672 = vmatprep.mubr.msk.bf16.mxu0 %vm633_vm1, %v2877_v20 }
  0x4e   : > { %2673 = vmatmul.mubr.msk.bf16.gmra.mrb[28].mxu0 %vm633_vm1, %v2878_v21 }
  0x4f   : > { %2676 = vmatprep.mubr.msk.bf16.mxu0 %vm633_vm1, %v2879_v22 }
  0x56   : > { %2677 = vmatmul.mubr.msk.bf16.gmra.mrb[32].mxu0 %vm633_vm1, %v2880_v23  ;;  %v462_v23 = vld [vmem:[%s4215_s5 + $0x28] sm:$0xff] }
  0x57   : > { %2680 = vmatprep.mubr.msk.bf16.mxu0 %vm633_vm1, %v2881_v24 }
  0x5e   : > { %2681 = vmatmul.mubr.msk.bf16.gmra.mrb[36].mxu0 %vm633_vm1, %v2882_v25 }
  0x5f   : > { %2724 = vmatprep.mubr.msk.f32.mxu0 %vm2992_vm2, %v2993_v50 }
  0xe9   : > { %v2646_v56 = vpop.f32.mrb[0].mxu0 }
  0xea   : > { %v744_v58 = vpop.f32.mrb[1].mxu0  ;;  %v3202_v59 = vadd.f32 %v2646_v56, %v3194_v55 }
  0xeb   : > { %v3205_v60 = vadd.f32 %v3194_v55, %v744_v58  ;;  %v2647_v61 = vpop.f32.mrb[2].mxu0 }
  0xec   : > { %v3211_v63 = vadd.f32 %v2647_v61, %v3194_v55  ;;  %v747_v1 = vpop.f32.mrb[3].mxu0  ;;  %v937_v5 = vmul.f32 %v3202_v59, %v459_v62  ;;  %v468_v61 = vld [vmem:[%s4215_s5 + $0x58] sm:$0xff] }
  0xed   : > { %v935_v2 = vmul.f32 %v3205_v60, %v3199_v57  ;;  %v3224_v4 = vadd.f32 %v3194_v55, %v747_v1  ;;  %v3283_v1 = vpop.f32.mrb[0].mxu1 }
  0xee   : > { %v938_v7 = vmul.f32 %v3211_v63, %v460_v3  ;;  %v1038_v15 = vmul.f32 %v937_v5, %v937_v5  ;;  %v3286_v3 = vpop.f32.mrb[1].mxu1 }
  0xef   : > { %v936_v6 = vmul.f32 %v3224_v4, %v3216_v0  ;;  %v1036_v8 = vmul.f32 %v935_v2, %v935_v2 }
  0xf0   : > { %v1039_v21 = vmul.f32 %v938_v7, %v938_v7 }
  0xf1   : > { %v983_v9 = vadd.f32 %v936_v6, %v935_v2  ;;  %v1037_v10 = vmul.f32 %v936_v6, %v936_v6  ;;  %v2650_v11 = vpop.f32.mrb[4].mxu0 }
  0xf2   : > { %v3231_v12 = vadd.f32 %v2650_v11, %v3194_v55  ;;  %v760_v14 = vpop.f32.mrb[5].mxu0 }
  0xf3   : > { %v984_v16 = vadd.f32 %v983_v9, %v937_v5  ;;  %v1084_v17 = vadd.f32 %v1037_v10, %v1036_v8  ;;  %v3240_v19 = vadd.f32 %v3194_v55, %v760_v14  ;;  %v2651_v20 = vpop.f32.mrb[6].mxu0  ;;  %v3289_v9 = vpop.f32.mrb[2].mxu1 }
  0xf4   : > { %v3243_v22 = vadd.f32 %v2651_v20, %v3194_v55  ;;  %v763_v24 = vpop.f32.mrb[7].mxu0  ;;  %v941_v31 = vmul.f32 %v3231_v12, %v463_v18  ;;  %v3292_v11 = vpop.f32.mrb[3].mxu1  ;;  %v469_v18 = vld [vmem:[%s4215_s5 + $0x60] sm:$0xff] }
  0xf5   : > { %v1085_v25 = vadd.f32 %v1084_v17, %v1038_v15  ;;  %v939_v26 = vmul.f32 %v3240_v19, %v461_v13  ;;  %v985_v27 = vadd.f32 %v984_v16, %v938_v7  ;;  %v3253_v30 = vadd.f32 %v3194_v55, %v763_v24 }
  0xf6   : > { %v942_v36 = vmul.f32 %v3243_v22, %v464_v29  ;;  %v1042_v44 = vmul.f32 %v941_v31, %v941_v31 }
  0xf7   : > { %v986_v32 = vadd.f32 %v985_v27, %v939_v26  ;;  %v1040_v33 = vmul.f32 %v939_v26, %v939_v26  ;;  %v1086_v34 = vadd.f32 %v1085_v25, %v1039_v21  ;;  %v940_v35 = vmul.f32 %v3253_v30, %v462_v23  ;;  %v471_v25 = vld [vmem:[%s4215_s5 + $0x70] sm:$0xff] }
  0xf8   : > { %v1043_v50 = vmul.f32 %v942_v36, %v942_v36 }
  0xf9   : > { %v1087_v37 = vadd.f32 %v1086_v34, %v1040_v33  ;;  %v987_v38 = vadd.f32 %v986_v32, %v940_v35  ;;  %v1041_v39 = vmul.f32 %v940_v35, %v940_v35  ;;  %v2654_v40 = vpop.f32.mrb[8].mxu0  ;;  %v470_v32 = vld [vmem:[%s4215_s5 + $0x68] sm:$0xff] }
  0xfa   : > { %v3259_v41 = vadd.f32 %v2654_v40, %v3194_v55  ;;  %v776_v43 = vpop.f32.mrb[9].mxu0 }
  0xfb   : > { %v988_v45 = vadd.f32 %v987_v38, %v941_v31  ;;  %v1088_v46 = vadd.f32 %v1087_v37, %v1041_v39  ;;  %v3268_v48 = vadd.f32 %v3194_v55, %v776_v43  ;;  %v2655_v49 = vpop.f32.mrb[10].mxu0  ;;  %v472_v37 = vld [vmem:[%s4215_s5 + $0x78] sm:$0xff]  ;;  %v3319_v39 = vpop.f32.mrb[4].mxu1 }
  0xfc   : > { %v3271_v51 = vadd.f32 %v2655_v49, %v3194_v55  ;;  %v779_v53 = vpop.f32.mrb[11].mxu0  ;;  %v945_v2 = vmul.f32 %v3259_v41, %v467_v47 }
  0xfd   : > { %v1089_v54 = vadd.f32 %v1088_v46, %v1042_v44  ;;  %v943_v56 = vmul.f32 %v3268_v48, %v465_v42  ;;  %v989_v58 = vadd.f32 %v988_v45, %v942_v36  ;;  %v3281_v62 = vadd.f32 %v3194_v55, %v779_v53  ;;  %v3322_v42 = vpop.f32.mrb[5].mxu1 }
  0xfe   : > { %v946_v10 = vmul.f32 %v3271_v51, %v468_v61  ;;  %v1046_v21 = vmul.f32 %v945_v2, %v945_v2  ;;  %v3325_v47 = vpop.f32.mrb[6].mxu1  ;;  %v3336_v61 = vld [vmem:[%s4215_s5 + $0x80] sm:$0xff] }
  0xff   : > { %v990_v5 = vadd.f32 %v989_v58, %v943_v56  ;;  %v1044_v6 = vmul.f32 %v943_v56, %v943_v56  ;;  %v1090_v7 = vadd.f32 %v1089_v54, %v1043_v50  ;;  %v944_v8 = vmul.f32 %v3281_v62, %v466_v52  ;;  %v3328_v50 = vpop.f32.mrb[7].mxu1  ;;  %4269 = vst [vmem:[#allocation4_spill] sm:$0xff] %v3336_v61 }
 0x100   : > { %v1047_v29 = vmul.f32 %v946_v10, %v946_v10 }
 0x101   : > { %v1091_v13 = vadd.f32 %v1090_v7, %v1044_v6  ;;  %v991_v14 = vadd.f32 %v990_v5, %v944_v8  ;;  %v1045_v15 = vmul.f32 %v944_v8, %v944_v8  ;;  %v2658_v16 = vpop.f32.mrb[12].mxu0  ;;  %v3341_v8 = vld [vmem:[%s4215_s5 + $0x90] sm:$0xff] }
 0x102   : > { %v3295_v17 = vadd.f32 %v2658_v16, %v3194_v55  ;;  %v792_v20 = vpop.f32.mrb[13].mxu0  ;;  %4270 = vst [vmem:[#allocation5_spill] sm:$0xff] %v3341_v8  ;;  %v3352_v16 = vld [vmem:[%s4215_s5 + $0x88] sm:$0xff] }
 0x103   : > { %v992_v23 = vadd.f32 %v991_v14, %v945_v2  ;;  %v1092_v24 = vadd.f32 %v1091_v13, %v1045_v15  ;;  %v3304_v26 = vadd.f32 %v3194_v55, %v792_v20  ;;  %v2659_v27 = vpop.f32.mrb[14].mxu0  ;;  %4271 = vst [vmem:[#allocation6_spill] sm:$0xff] %v3352_v16 }
 0x104   : > { %v3307_v31 = vadd.f32 %v2659_v27, %v3194_v55  ;;  %v795_v33 = vpop.f32.mrb[15].mxu0  ;;  %v949_v40 = vmul.f32 %v3295_v17, %v471_v25 }
 0x105   : > { %v1093_v34 = vadd.f32 %v1092_v24, %v1046_v21  ;;  %v947_v35 = vmul.f32 %v3304_v26, %v469_v18  ;;  %v993_v36 = vadd.f32 %v992_v23, %v946_v10  ;;  %v3317_v38 = vadd.f32 %v3194_v55, %v795_v33  ;;  %v3359_v24 = vld [vmem:[%s4215_s5 + $0x98] sm:$0xff] }
 0x106   : > { %v950_v49 = vmul.f32 %v3307_v31, %v472_v37  ;;  %v1050_v5 = vmul.f32 %v949_v40, %v949_v40  ;;  %4272 = vst [vmem:[#allocation7_spill] sm:$0xff] %v3359_v24 }
 0x107   : > { %v994_v43 = vadd.f32 %v993_v36, %v947_v35  ;;  %v1048_v44 = vmul.f32 %v947_v35, %v947_v35  ;;  %v1094_v45 = vadd.f32 %v1093_v34, %v1047_v29  ;;  %v948_v46 = vmul.f32 %v3317_v38, %v470_v32 }
 0x108   : > { %v1051_v14 = vmul.f32 %v950_v49, %v950_v49 }
 0x109   : > { %v1095_v52 = vadd.f32 %v1094_v45, %v1048_v44  ;;  %v995_v53 = vadd.f32 %v994_v43, %v948_v46  ;;  %v1049_v54 = vmul.f32 %v948_v46, %v948_v46  ;;  %v2662_v56 = vpop.f32.mrb[16].mxu0  ;;  %v3376_v45 = vld [vmem:[%s4215_s5 + $0xa0] sm:$0xff] }
 0x10a   : > { %v3331_v58 = vadd.f32 %v2662_v56, %v3194_v55  ;;  %v808_v2 = vpop.f32.mrb[17].mxu0  ;;  %4273 = vst [vmem:[#allocation8_spill] sm:$0xff] %v3376_v45 }
 0x10b   : > { %v996_v6 = vadd.f32 %v995_v53, %v949_v40  ;;  %v1096_v7 = vadd.f32 %v1095_v52, %v1049_v54  ;;  %v3344_v10 = vadd.f32 %v3194_v55, %v808_v2  ;;  %v2663_v13 = vpop.f32.mrb[18].mxu0  ;;  %v3381_v54 = vld [vmem:[%s4215_s5 + $0xb0] sm:$0xff] }
 0x10c   : > { %v3347_v15 = vadd.f32 %v2663_v13, %v3194_v55  ;;  %v811_v18 = vpop.f32.mrb[19].mxu0  ;;  %v953_v27 = vmul.f32 %v3331_v58, %v3341_v8  ;;  %4274 = vst [vmem:[#allocation9_spill] sm:$0xff] %v3381_v54 }
 0x10d   : > { %v1097_v20 = vadd.f32 %v1096_v7, %v1050_v5  ;;  %v951_v21 = vmul.f32 %v3344_v10, %v3336_v61  ;;  %v997_v23 = vadd.f32 %v996_v6, %v950_v49  ;;  %v3362_v25 = vadd.f32 %v3194_v55, %v811_v18  ;;  %v3392_v7 = vld [vmem:[%s4215_s5 + $0xa8] sm:$0xff] }
 0x10e   : > { %v954_v35 = vmul.f32 %v3347_v15, %v3359_v24  ;;  %v1054_v49 = vmul.f32 %v953_v27, %v953_v27  ;;  %4275 = vst [vmem:[#allocation10_spill] sm:$0xff] %v3392_v7 }
 0x10f   : > { %v998_v29 = vadd.f32 %v997_v23, %v951_v21  ;;  %v1052_v32 = vmul.f32 %v951_v21, %v951_v21  ;;  %v1098_v33 = vadd.f32 %v1097_v20, %v1051_v14  ;;  %v952_v34 = vmul.f32 %v3362_v25, %v3352_v16  ;;  %v3399_v21 = vld [vmem:[%s4215_s5 + $0xb8] sm:$0xff] }
 0x110   : > { %v1055_v5 = vmul.f32 %v954_v35, %v954_v35  ;;  %4276 = vst [vmem:[#allocation11_spill] sm:$0xff] %v3399_v21 }
 0x111   : > { %v1099_v36 = vadd.f32 %v1098_v33, %v1052_v32  ;;  %v999_v37 = vadd.f32 %v998_v29, %v952_v34  ;;  %v1053_v40 = vmul.f32 %v952_v34, %v952_v34  ;;  %v2666_v43 = vpop.f32.mrb[20].mxu0 }
 0x112   : > { %v3371_v44 = vadd.f32 %v2666_v43, %v3194_v55  ;;  %v824_v46 = vpop.f32.mrb[21].mxu0 }
 0x113   : > { %v1000_v52 = vadd.f32 %v999_v37, %v953_v27  ;;  %v1100_v53 = vadd.f32 %v1099_v36, %v1053_v40  ;;  %v3384_v56 = vadd.f32 %v3194_v55, %v824_v46  ;;  %v2667_v2 = vpop.f32.mrb[22].mxu0 }
 0x114   : > { %v3387_v6 = vadd.f32 %v2667_v2, %v3194_v55  ;;  %v827_v13 = vpop.f32.mrb[23].mxu0  ;;  %v957_v27 = vmul.f32 %v3371_v44, %v3381_v54 }
 0x115   : > { %v1101_v14 = vadd.f32 %v1100_v53, %v1054_v49  ;;  %v955_v18 = vmul.f32 %v3384_v56, %v3376_v45  ;;  %v1001_v20 = vadd.f32 %v1000_v52, %v954_v35  ;;  %v3402_v23 = vadd.f32 %v3194_v55, %v827_v13  ;;  %v3416_v49 = vld [vmem:[%s4215_s5 + $0xc0] sm:$0xff]  ;;  %v3421_v13 = vld [vmem:[%s4215_s5 + $0xd0] sm:$0xff] }
 0x116   : > { %v958_v35 = vmul.f32 %v3387_v6, %v3399_v21  ;;  %4277 = vst [vmem:[#allocation12_spill] sm:$0xff] %v3416_v49  ;;  %v1058_v53 = vmul.f32 %v957_v27, %v957_v27  ;;  %4278 = vst [vmem:[#allocation13_spill] sm:$0xff] %v3421_v13 }
 0x117   : > { %v1002_v29 = vadd.f32 %v1001_v20, %v955_v18  ;;  %v1056_v32 = vmul.f32 %v955_v18, %v955_v18  ;;  %v1102_v33 = vadd.f32 %v1101_v14, %v1055_v5  ;;  %v956_v34 = vmul.f32 %v3402_v23, %v3392_v7 }
 0x118   : > { %v1059_v20 = vmul.f32 %v958_v35, %v958_v35 }
 0x119   : > { %v1103_v36 = vadd.f32 %v1102_v33, %v1056_v32  ;;  %v1003_v37 = vadd.f32 %v1002_v29, %v956_v34  ;;  %v1057_v40 = vmul.f32 %v956_v34, %v956_v34  ;;  %v2670_v43 = vpop.f32.mrb[24].mxu0  ;;  %v3432_v32 = vld [vmem:[%s4215_s5 + $0xc8] sm:$0xff] }
 0x11a   : > { %v3411_v46 = vadd.f32 %v2670_v43, %v3194_v55  ;;  %v840_v52 = vpop.f32.mrb[25].mxu0  ;;  %4279 = vst [vmem:[#allocation14_spill] sm:$0xff] %v3432_v32 }
 0x11b   : > { %v1004_v2 = vadd.f32 %v1003_v37, %v957_v27  ;;  %v1104_v5 = vadd.f32 %v1103_v36, %v1057_v40  ;;  %v3424_v14 = vadd.f32 %v3194_v55, %v840_v52  ;;  %v2671_v18 = vpop.f32.mrb[26].mxu0  ;;  %v3439_v37 = vld [vmem:[%s4215_s5 + $0xd8] sm:$0xff] }
 0x11c   : > { %v3427_v29 = vadd.f32 %v2671_v18, %v3194_v55  ;;  %v843_v27 = vpop.f32.mrb[27].mxu0  ;;  %4280 = vst [vmem:[#allocation15_spill] sm:$0xff] %v3439_v37  ;;  %v961_v43 = vmul.f32 %v3411_v46, %v3421_v13 }
 0x11d   : > { %v1105_v33 = vadd.f32 %v1104_v5, %v1058_v53  ;;  %v959_v34 = vmul.f32 %v3424_v14, %v3416_v49  ;;  %v1005_v36 = vadd.f32 %v1004_v2, %v958_v35  ;;  %v3442_v40 = vadd.f32 %v3194_v55, %v843_v27  ;;  %v3456_v27 = vld [vmem:[%s4215_s5 + $0xe0] sm:$0xff] }
 0x11e   : > { %v962_v35 = vmul.f32 %v3427_v29, %v3439_v37  ;;  %4281 = vst [vmem:[#allocation16_spill] sm:$0xff] %v3456_v27  ;;  %v3461_v37 = vld [vmem:[%s4215_s5 + $0xf0] sm:$0xff] }
 0x11f   : > { %v1006_v52 = vadd.f32 %v1005_v36, %v959_v34  ;;  %v1060_v18 = vmul.f32 %v959_v34, %v959_v34  ;;  %v1106_v28 = vadd.f32 %v1105_v33, %v1059_v20  ;;  %v960_v53 = vmul.f32 %v3442_v40, %v3432_v32  ;;  %4282 = vst [vmem:[#allocation17_spill] sm:$0xff] %v3461_v37 }
 0x120   : > { %v1062_v20 = vmul.f32 %v961_v43, %v961_v43 }
 0x121   : > { %v1107_v2 = vadd.f32 %v1106_v28, %v1060_v18  ;;  %v1007_v5 = vadd.f32 %v1006_v52, %v960_v53  ;;  %v1061_v49 = vmul.f32 %v960_v53, %v960_v53  ;;  %v2674_v21 = vpop.f32.mrb[28].mxu0  ;;  %v3472_v53 = vld [vmem:[%s4215_s5 + $0xe8] sm:$0xff] }
 0x122   : > { %v3451_v54 = vadd.f32 %v2674_v21, %v3194_v55  ;;  %v856_v34 = vpop.f32.mrb[29].mxu0  ;;  %v1063_v21 = vmul.f32 %v962_v35, %v962_v35  ;;  %4283 = vst [vmem:[#allocation18_spill] sm:$0xff] %v3472_v53 }
 0x123   : > { %v1008_v33 = vadd.f32 %v1007_v5, %v961_v43  ;;  %v1108_v36 = vadd.f32 %v1107_v2, %v1061_v49  ;;  %v3464_v28 = vadd.f32 %v3194_v55, %v856_v34  ;;  %v2675_v52 = vpop.f32.mrb[30].mxu0  ;;  %v3479_v34 = vld [vmem:[%s4215_s5 + $0xf8] sm:$0xff] }
 0x124   : > { %v3467_v18 = vadd.f32 %v2675_v52, %v3194_v55  ;;  %v859_v43 = vpop.f32.mrb[31].mxu0  ;;  %4284 = vst [vmem:[#allocation19_spill] sm:$0xff] %v3479_v34  ;;  %v965_v52 = vmul.f32 %v3451_v54, %v3461_v37 }
 0x125   : > { %v1109_v49 = vadd.f32 %v1108_v36, %v1062_v20  ;;  %v963_v2 = vmul.f32 %v3464_v28, %v3456_v27  ;;  %v1009_v5 = vadd.f32 %v1008_v33, %v962_v35  ;;  %v3482_v13 = vadd.f32 %v3194_v55, %v859_v43  ;;  %v3496_v43 = vld [vmem:[%s4215_s5 + $0x100] sm:$0xff] }
 0x126   : > { %v966_v35 = vmul.f32 %v3467_v18, %v3479_v34  ;;  %4285 = vst [vmem:[#allocation20_spill] sm:$0xff] %v3496_v43  ;;  %v3501_v34 = vld [vmem:[%s4215_s5 + $0x110] sm:$0xff] }
 0x127   : > { %v1010_v32 = vadd.f32 %v1009_v5, %v963_v2  ;;  %v1064_v7 = vmul.f32 %v963_v2, %v963_v2  ;;  %v1110_v45 = vadd.f32 %v1109_v49, %v1063_v21  ;;  %v964_v20 = vmul.f32 %v3482_v13, %v3472_v53  ;;  %4286 = vst [vmem:[#allocation21_spill] sm:$0xff] %v3501_v34 }
 0x128   : > { %v1066_v21 = vmul.f32 %v965_v52, %v965_v52 }
 0x129   : > { %v1111_v33 = vadd.f32 %v1110_v45, %v1064_v7  ;;  %v1011_v36 = vadd.f32 %v1010_v32, %v964_v20  ;;  %v1065_v27 = vmul.f32 %v964_v20, %v964_v20  ;;  %v2678_v24 = vpop.f32.mrb[32].mxu0  ;;  %v3512_v20 = vld [vmem:[%s4215_s5 + $0x108] sm:$0xff] }
 0x12a   : > { %v3491_v8 = vadd.f32 %v2678_v24, %v3194_v55  ;;  %v872_v2 = vpop.f32.mrb[33].mxu0  ;;  %v1067_v24 = vmul.f32 %v966_v35, %v966_v35  ;;  %4288 = vst [vmem:[#allocation23_spill] sm:$0xff] %v3512_v20 }
 0x12b   : > { %v1012_v49 = vadd.f32 %v1011_v36, %v965_v52  ;;  %v1112_v5 = vadd.f32 %v1111_v33, %v1065_v27  ;;  %v3504_v45 = vadd.f32 %v3194_v55, %v872_v2  ;;  %v2679_v7 = vpop.f32.mrb[34].mxu0  ;;  %v3519_v2 = vld [vmem:[%s4215_s5 + $0x118] sm:$0xff] }
 0x12c   : > { %v3507_v32 = vadd.f32 %v2679_v7, %v3194_v55  ;;  %v875_v52 = vpop.f32.mrb[35].mxu0  ;;  %4289 = vst [vmem:[#allocation24_spill] sm:$0xff] %v3519_v2  ;;  %v969_v7 = vmul.f32 %v3491_v8, %v3501_v34 }
 0x12d   : > { %v1113_v27 = vadd.f32 %v1112_v5, %v1066_v21  ;;  %v967_v33 = vmul.f32 %v3504_v45, %v3496_v43  ;;  %v1013_v36 = vadd.f32 %v1012_v49, %v966_v35  ;;  %v3522_v37 = vadd.f32 %v3194_v55, %v875_v52  ;;  %v3536_v52 = vld [vmem:[%s4215_s5 + $0x120] sm:$0xff] }
 0x12e   : > { %4287 = vst [vmem:[#allocation22_spill] sm:$0xff] %v3507_v32  ;;  %v970_v35 = vmul.f32 %v3507_v32, %v3519_v2  ;;  %4291 = vst [vmem:[#allocation26_spill] sm:$0xff] %v3536_v52  ;;  %v3541_v2 = vld [vmem:[%s4215_s5 + $0x130] sm:$0xff] }
 0x12f   : > { %v1014_v53 = vadd.f32 %v1013_v36, %v967_v33  ;;  %v1068_v16 = vmul.f32 %v967_v33, %v967_v33  ;;  %v1114_v61 = vadd.f32 %v1113_v27, %v1067_v24  ;;  %v968_v21 = vmul.f32 %v3522_v37, %v3512_v20  ;;  %4292 = vst [vmem:[#allocation27_spill] sm:$0xff] %v3541_v2 }
 0x130   : > { %v1070_v24 = vmul.f32 %v969_v7, %v969_v7 }
 0x131   : > { %v1115_v49 = vadd.f32 %v1114_v61, %v1068_v16  ;;  %v1015_v5 = vadd.f32 %v1014_v53, %v968_v21  ;;  %v1069_v43 = vmul.f32 %v968_v21, %v968_v21  ;;  %v2682_v0 = vpop.f32.mrb[36].mxu0  ;;  %v3552_v21 = vld [vmem:[%s4215_s5 + $0x128] sm:$0xff] }
 0x132   : > { %v3531_v57 = vadd.f32 %v2682_v0, %v3194_v55  ;;  %v888_v33 = vpop.f32.mrb[37].mxu0  ;;  %v1071_v0 = vmul.f32 %v970_v35, %v970_v35  ;;  %4295 = vst [vmem:[#allocation30_spill] sm:$0xff] %v3552_v21 }
 0x133   : > { %v1016_v27 = vadd.f32 %v1015_v5, %v969_v7  ;;  %v1116_v36 = vadd.f32 %v1115_v49, %v1069_v43  ;;  %v3544_v61 = vadd.f32 %v3194_v55, %v888_v33  ;;  %v2683_v16 = vpop.f32.mrb[38].mxu0  ;;  %v3556_v43 = vadd.f32 %v3194_v55, %v3286_v3  ;;  %v3573_v3 = vld [vmem:[%s4215_s5 + $0x138] sm:$0xff] }
 0x134   : > { %4290 = vst [vmem:[#allocation25_spill] sm:$0xff] %v3531_v57  ;;  %v3547_v53 = vadd.f32 %v2683_v16, %v3194_v55  ;;  %v891_v7 = vpop.f32.mrb[39].mxu0  ;;  %v3566_v16 = vld [vmem:[%s4215_s5 + $0x140] sm:$0xff]  ;;  %v973_v20 = vmul.f32 %v3531_v57, %v3541_v2  ;;  %4298 = vst [vmem:[#allocation33_spill] sm:$0xff] %v3573_v3 }
 0x135   : > { %4293 = vst [vmem:[#allocation28_spill] sm:$0xff] %v3544_v61  ;;  %4296 = vst [vmem:[#allocation31_spill] sm:$0xff] %v3556_v43  ;;  %v1117_v49 = vadd.f32 %v1116_v36, %v1070_v24  ;;  %v971_v5 = vmul.f32 %v3544_v61, %v3536_v52  ;;  %v1017_v33 = vadd.f32 %v1016_v27, %v970_v35 }
 0x136   : > { %4294 = vst [vmem:[#allocation29_spill] sm:$0xff] %v3547_v53  ;;  %v3561_v34 = vadd.f32 %v3194_v55, %v891_v7  ;;  %4297 = vst [vmem:[#allocation32_spill] sm:$0xff] %v3566_v16  ;;  %v975_v27 = vmul.f32 %v3556_v43, %v3566_v16  ;;  %v3581_v7 = vadd.f32 %v3194_v55, %v3292_v11  ;;  %v3597_v11 = vld [vmem:[%s4215_s5 + $0x150] sm:$0xff] }
 0x137   : > { %v1018_v24 = vadd.f32 %v1017_v33, %v971_v5  ;;  %v1072_v36 = vmul.f32 %v971_v5, %v971_v5  ;;  %v1118_v52 = vadd.f32 %v1117_v49, %v1071_v0  ;;  %v974_v2 = vmul.f32 %v3547_v53, %v3573_v3  ;;  %v3588_v0 = vld [vmem:[%s4215_s5 + $0x148] sm:$0xff]  ;;  %4302 = vst [vmem:[#allocation37_spill] sm:$0xff] %v3597_v11 }
 0x138   : > { %v972_v35 = vmul.f32 %v3561_v34, %v3552_v21  ;;  %4299 = vst [vmem:[#allocation34_spill] sm:$0xff] %v3581_v7  ;;  %4300 = vst [vmem:[#allocation35_spill] sm:$0xff] %v3588_v0  ;;  %v1074_v49 = vmul.f32 %v973_v20, %v973_v20  ;;  %v3592_v16 = vadd.f32 %v3283_v1, %v3194_v55  ;;  %v3608_v1 = vld [vmem:[%s4215_s5 + $0x158] sm:$0xff] }
 0x139   : > { %v1119_v61 = vadd.f32 %v1118_v52, %v1072_v36  ;;  %v1076_v52 = vmul.f32 %v975_v27, %v975_v27  ;;  %v976_v36 = vmul.f32 %v3581_v7, %v3588_v0  ;;  %4304 = vst [vmem:[#allocation39_spill] sm:$0xff] %v3608_v1  ;;  %v3627_v21 = vadd.f32 %v3194_v55, %v3328_v50  ;;  %v3632_v7 = vld [vmem:[%s4215_s5 + $0x168] sm:$0xff] }
 0x13a   : > { %v1019_v57 = vadd.f32 %v1018_v24, %v972_v35  ;;  %v1073_v32 = vmul.f32 %v972_v35, %v972_v35  ;;  %4301 = vst [vmem:[#allocation36_spill] sm:$0xff] %v3592_v16  ;;  %v3601_v24 = vadd.f32 %v3289_v9, %v3194_v55  ;;  %v1075_v35 = vmul.f32 %v974_v2, %v974_v2  ;;  %v3617_v9 = vld [vmem:[%s4215_s5 + $0x160] sm:$0xff] }
 0x13b   : > { %4306 = vst [vmem:[#allocation41_spill] sm:$0xff] %v3617_v9  ;;  %4307 = vst [vmem:[#allocation42_spill] sm:$0xff] %v3627_v21  ;;  %v3645_v50 = vadd.f32 %v3325_v47, %v3194_v55 }
 0x13c   : > { %v1020_v5 = vadd.f32 %v1019_v57, %v973_v20  ;;  %v1120_v33 = vadd.f32 %v1119_v61, %v1073_v32  ;;  %4303 = vst [vmem:[#allocation38_spill] sm:$0xff] %v3601_v24  ;;  %v3612_v20 = vadd.f32 %v3194_v55, %v3322_v42  ;;  %v977_v61 = vmul.f32 %v3592_v16, %v3597_v11 }
 0x13d   : > { %4308 = vst [vmem:[#allocation43_spill] sm:$0xff] %v3632_v7 }
 0x13e   : > { %v1121_v57 = vadd.f32 %v1120_v33, %v1074_v49  ;;  %v1021_v32 = vadd.f32 %v1020_v5, %v974_v2  ;;  %4305 = vst [vmem:[#allocation40_spill] sm:$0xff] %v3612_v20  ;;  %v978_v2 = vmul.f32 %v3601_v24, %v3608_v1  ;;  %v1077_v5 = vmul.f32 %v976_v36, %v976_v36 }
 0x13f   : > { %v979_v42 = vmul.f32 %v3612_v20, %v3617_v9 }
 0x140   : > { %v1022_v0 = vadd.f32 %v1021_v32, %v975_v27  ;;  %v1122_v49 = vadd.f32 %v1121_v57, %v1075_v35  ;;  %v1078_v27 = vmul.f32 %v977_v61, %v977_v61  ;;  %v3636_v32 = vadd.f32 %v3319_v39, %v3194_v55  ;;  %v3652_v39 = vld [vmem:[%s4215_s5 + $0x178] sm:$0xff] }
 0x141   : > { %v1080_v9 = vmul.f32 %v979_v42, %v979_v42  ;;  %4310 = vst [vmem:[#allocation45_spill] sm:$0xff] %v3652_v39  ;;  %v982_v55 = vmul.f32 %v3645_v50, %v3652_v39  ;;  %v4329_v39 = vld [vmem:[#allocation6_spill] sm:$0xff] }
 0x142   : > { %v1123_v33 = vadd.f32 %v1122_v49, %v1076_v52  ;;  %v1023_v3 = vadd.f32 %v1022_v0, %v976_v36  ;;  %v1079_v0 = vmul.f32 %v978_v2, %v978_v2  ;;  %v3641_v52 = vld [vmem:[%s4215_s5 + $0x170] sm:$0xff] }
 0x143   : > { %4309 = vst [vmem:[#allocation44_spill] sm:$0xff] %v3641_v52 }
 0x144   : > { %v1024_v35 = vadd.f32 %v1023_v3, %v977_v61  ;;  %v1124_v57 = vadd.f32 %v1123_v33, %v1077_v5  ;;  %v980_v3 = vmul.f32 %v3627_v21, %v3632_v7  ;;  %v981_v61 = vmul.f32 %v3636_v32, %v3641_v52 }
 0x145   : > { %v1083_v7 = vmul.f32 %v982_v55, %v982_v55 }
 0x146   : > { %v1125_v36 = vadd.f32 %v1124_v57, %v1078_v27  ;;  %v1025_v49 = vadd.f32 %v1024_v35, %v978_v2  ;;  %v1081_v2 = vmul.f32 %v980_v3, %v980_v3  ;;  %v1082_v27 = vmul.f32 %v981_v61, %v981_v61 }
 0x148   : > { %v1026_v5 = vadd.f32 %v1025_v49, %v979_v42  ;;  %v1126_v33 = vadd.f32 %v1125_v36, %v1079_v0 }
 0x14a   : > { %v1127_v1 = vadd.f32 %v1126_v33, %v1080_v9  ;;  %v1027_v47 = vadd.f32 %v1026_v5, %v980_v3  ;;  %v2402_v33 = vld [vmem:[%s4218_s8] ss:$0 sm:$0xff] }
 0x14c   : > { %v1028_v35 = vadd.f32 %v1027_v47, %v981_v61  ;;  %v1128_v57 = vadd.f32 %v1127_v1, %v1081_v2  ;;  %v1242_v1 = vld [vmem:[%s4217_s7 + $0x10] sm:$0xff] }
 0x14e   : > { %v1029_v11 = vadd.f32 %v1028_v35, %v982_v55  ;;  %v1129_v21 = vadd.f32 %v1128_v57, %v1082_v27 }
 0x150   : > { %v1030_v20 = vrot.slane %v1029_v11, 4  ;;  %v1130_v24 = vadd.f32 %v1129_v21, %v1083_v7  ;;  %v1243_v21 = vld [vmem:[%s4217_s7 + $0x18] sm:$0xff]  ;;  %v1245_v7 = vld [vmem:[%s4217_s7 + $0x28] sm:$0xff] }
 0x152   : > { %v1031_v16 = vadd.f32 %v1030_v20, %v1029_v11  ;;  %v1131_v43 = vrot.slane %v1130_v24, 4  ;;  %v1247_v20 = vld [vmem:[%s4217_s7 + $0x38] sm:$0xff] }
 0x154   : > { %v1032_v53 = vrot.slane %v1031_v16, 2  ;;  %v1132_v52 = vadd.f32 %v1131_v43, %v1130_v24  ;;  %v2822_v43 = vpack.c.bf16 %v1243_v21, %v1242_v1  ;;  %v1246_v24 = vld [vmem:[%s4217_s7 + $0x30] sm:$0xff]  ;;  %v1329_v21 = vlaneseq }
 0x156   : > { %v1033_v42 = vadd.f32 %v1032_v53, %v1031_v16  ;;  %v1133_v0 = vrot.slane %v1132_v52, 2  ;;  %2823 = vmatpush3.bf16.msra.mxu1 %v2822_v43  ;;  %v4311_v53 = vmov 0.0|0.0   ;;  %v1244_v16 = vld [vmem:[%s4217_s7 + $0x20] sm:$0xff] }
 0x157   : > { %2824 = vmatprep.subr.bf16.mxu1 %v4311_v53  ;;  %v2825_v11 = vpack.c.bf16 %v1245_v7, %v1244_v16 }
 0x158   : > { %v1034_v9 = vrot.slane %v1033_v42, 1  ;;  %v1134_v36 = vadd.f32 %v1133_v0, %v1132_v52  ;;  %v2828_v52 = vpack.c.bf16 %v1247_v20, %v1246_v24 }
 0x15a   : > { %v1135_v49 = vrot.slane %v1134_v36, 1  ;;  %v1035_v5 = vadd.f32 %v1034_v9, %v1033_v42  ;;  %2826 = vmatpush3.bf16.msra.mxu1 %v2825_v11  ;;  %v2889_v9 = vld [vmem:[%s4219_s9 + $0x4] ss:$12 sps:$4 sm:$0xff]  }
 0x15b   : > { %2827 = vmatprep.subr.bf16.mxu1 %v4311_v53  ;;  %v1330_v53 = vshrl.u32 %v1329_v21, 7 }
 0x15c   : > { %v1136_v3 = vadd.f32 %v1135_v49, %v1134_v36  ;;  %v2890_v36 = vld [vmem:[%s4219_s9 + $0x8] ss:$12 sps:$4 sm:$0xff]  }
 0x15e   : > { %v1138_v61 = vsel %vm1137_vm3, %v1035_v5, %v1136_v3  ;;  %2829 = vmatpush3.bf16.msra.mxu1 %v2828_v52  ;;  %v1322_v52 = vld [vmem:[%s4213_s3] sm:$0x1] }
 0x15f   : > { %2725 = vmatmul.mubr.f32.vlgmr.msra.gmra.mrb[40].mxu0 %v1138_v61  ;;  %v2994_v61 = vmov 1966171168  }
 0x160   : > { %2762 = vmatprep.mubr.bf16.mxu0 %v2890_v36  ;;  %v1327_v1 = vunpack.c.l.s4 %v2994_v61 }
 0x162   : > { %v1328_v43 = vunpack.c.0.s8 %v1327_v1 }
 0x164   : > { %v1331_v16 = vsub.s32 %v1328_v43, %v1330_v53  ;;  %v4312_v43 = vld [vmem:[#allocation22_spill] sm:$0xff] }
 0x232   : > { %v1221_v55 = vpop.f32.mrb[40].mxu0 }
 0x233   : > { %v1232_v47 = vmul.f32 %v2402_v33, %v1221_v55  ;;  %v2726_v2 = vpop.f32.mrb[41].mxu0  ;;  %v1349_v55 = vsub.s32 0, %v1330_v53  ;;  %v4313_v53 = vld [vmem:[#allocation28_spill] sm:$0xff] }
 0x234   : > { %v1343_v2 = vld [vmem:[%s4214_s4] sm:$0x1] }
 0x235   : > { %v1233_v27 = vmul.f32 %v1232_v47, %v1232_v47 }
 0x237   : > { %v1235_v35 = vrot.slane %v1233_v27, 7 }
 0x239   : > { %v1237_v57 = vsub.f32 %v1232_v47, %v1235_v35 }
 0x23b   : > { %v1238_v42 = vmax.f32 %v1237_v57, 0.0 }
 0x23d   : > { %v1239_v0 = vsel %vm1137_vm3, %v1232_v47, %v1238_v42 }
 0x23e   : > { %2744 = vmatmul.mubr.msk.f32.vlgmr.msra.gmra.mrb[8].mxu1 %vm1248_vm4, %v1239_v0 }
 0x23f   : > { %1926 = vmatprep.mubr.bf16.mxu1 %v2889_v9 }
 0x311   : > { %v1318_v49 = vpop.f32.mrb[8].mxu1 }
 0x312   : > { %v2745_v5 = vpop.f32.mrb[9].mxu1  ;;  %v1323_v3 = vadd.f32 1e-05, %v1318_v49 }
 0x314   : > { %2951 = vrsqrt.f32 %v1323_v3 }
 0x31e   : > { %v2952_v7 = vpop.eup %2951 }
 0x31f   : > { %v1332_v11 = vrot.slane %v2952_v7, %v1331_v16  ;;  %v4315_v7 = vld [vmem:[#allocation29_spill] sm:$0xff] }
 0x321   : > { %v1333_v24 = vcombine.high %v1332_v11, %v1332_v11  ;;  %v4316_v11 = vld [vmem:[#allocation31_spill] sm:$0xff] }
 0x323   : > { %v1340_v20 = vrot.slane %v1333_v24, %v1331_v16  ;;  %v4314_v16 = vld [vmem:[#allocation25_spill] sm:$0xff]  ;;  %v4317_v24 = vld [vmem:[#allocation34_spill] sm:$0xff] }
 0x325   : > { %v1342_v33 = vmul.f32 %v1340_v20, %v1322_v52  ;;  %v4318_v20 = vld [vmem:[#allocation36_spill] sm:$0xff]  ;;  %v4319_v52 = vld [vmem:[#allocation38_spill] sm:$0xff] }
 0x327   : > { %v1344_v47 = vmul.f32 %v1342_v33, %v1318_v49  ;;  %v1350_v27 = vrot.slane %v1342_v33, %v1349_v55  ;;  %v4320_v33 = vld [vmem:[#allocation40_spill] sm:$0xff] }
 0x329   : > { %v1345_v35 = vsub.f32 %v1343_v2, %v1344_v47  ;;  %v1352_v57 = vmul.f32 %v1350_v27, %v3205_v60  ;;  %v1353_v42 = vmul.f32 %v1350_v27, %v3224_v4  ;;  %v1354_v0 = vmul.f32 %v1350_v27, %v3202_v59 }
 0x32a   : > { %v1355_v9 = vmul.f32 %v1350_v27, %v3211_v63  ;;  %v1356_v5 = vmul.f32 %v1350_v27, %v3240_v19  ;;  %v1357_v49 = vmul.f32 %v1350_v27, %v3253_v30  ;;  %v1358_v3 = vmul.f32 %v1350_v27, %v3231_v12 }
 0x32b   : > { %v3699_v36 = vrot.slane %v1345_v35, %v1349_v55  ;;  %v1359_v61 = vmul.f32 %v1350_v27, %v3243_v22  ;;  %v1360_v1 = vmul.f32 %v1350_v27, %v3268_v48  ;;  %v1361_v60 = vmul.f32 %v1350_v27, %v3281_v62  ;;  %v4321_v55 = vld [vmem:[#allocation42_spill] sm:$0xff] }
 0x32c   : > { %v1362_v4 = vmul.f32 %v1350_v27, %v3259_v41  ;;  %v1363_v59 = vmul.f32 %v1350_v27, %v3271_v51  ;;  %v1364_v63 = vmul.f32 %v1350_v27, %v3304_v26  ;;  %v1365_v21 = vmul.f32 %v1350_v27, %v3317_v38 }
 0x32d   : > { %v1366_v19 = vmul.f32 %v1350_v27, %v3295_v17  ;;  %v3713_v30 = vmul.f32 %v1350_v27, %v3307_v31  ;;  %v1368_v12 = vmul.f32 %v1350_v27, %v3344_v10  ;;  %v1369_v22 = vmul.f32 %v1350_v27, %v3362_v25 }
 0x32e   : > { %v1370_v48 = vmul.f32 %v1350_v27, %v3331_v58  ;;  %v1371_v62 = vmul.f32 %v1350_v27, %v3347_v15  ;;  %v1372_v41 = vmul.f32 %v1350_v27, %v3384_v56  ;;  %v1373_v51 = vmul.f32 %v1350_v27, %v3402_v23 }
 0x32f   : > { %v1374_v26 = vmul.f32 %v1350_v27, %v3371_v44  ;;  %v1375_v38 = vmul.f32 %v1350_v27, %v3387_v6  ;;  %v1376_v17 = vmul.f32 %v1350_v27, %v3424_v14  ;;  %v1377_v31 = vmul.f32 %v1350_v27, %v3442_v40 }
 0x330   : > { %v1378_v10 = vmul.f32 %v1350_v27, %v3411_v46  ;;  %v1379_v25 = vmul.f32 %v1350_v27, %v3427_v29  ;;  %v1380_v58 = vmul.f32 %v1350_v27, %v3464_v28  ;;  %v1381_v15 = vmul.f32 %v1350_v27, %v3482_v13 }
 0x331   : > { %v1382_v56 = vmul.f32 %v1350_v27, %v3451_v54  ;;  %v1383_v23 = vmul.f32 %v1350_v27, %v3467_v18  ;;  %v1384_v44 = vmul.f32 %v1350_v27, %v3504_v45  ;;  %v1385_v6 = vmul.f32 %v1350_v27, %v3522_v37 }
 0x332   : > { %v1386_v14 = vmul.f32 %v1350_v27, %v3491_v8  ;;  %v1387_v40 = vmul.f32 %v1350_v27, %v4312_v43  ;;  %v1388_v46 = vmul.f32 %v1350_v27, %v4313_v53  ;;  %v1389_v29 = vmul.f32 %v1350_v27, %v3561_v34 }
 0x333   : > { %v1390_v28 = vmul.f32 %v1350_v27, %v4314_v16  ;;  %v1391_v13 = vmul.f32 %v1350_v27, %v4315_v7  ;;  %v1392_v54 = vmul.f32 %v1350_v27, %v4316_v11  ;;  %v1393_v18 = vmul.f32 %v1350_v27, %v4317_v24 }
 0x334   : > { %v1394_v45 = vmul.f32 %v1350_v27, %v4318_v20  ;;  %v1395_v37 = vmul.f32 %v1350_v27, %v4319_v52  ;;  %v1396_v8 = vmul.f32 %v1350_v27, %v4320_v33  ;;  %v3745_v47 = vmul.f32 %v1350_v27, %v4321_v55 }
 0x335   : > { %v3748_v2 = vmul.f32 %v1350_v27, %v3636_v32  ;;  %v3751_v34 = vmul.f32 %v1350_v27, %v3645_v50  ;;  %v1406_v35 = vadd.f32 %v3699_v36, %v1352_v57  ;;  %v1407_v43 = vadd.f32 %v3699_v36, %v1353_v42 }
 0x336   : > { %v3756_v53 = vadd.f32 %v3699_v36, %v1354_v0  ;;  %v3759_v16 = vadd.f32 %v3699_v36, %v1355_v9  ;;  %v3762_v7 = vadd.f32 %v3699_v36, %v1356_v5  ;;  %v3765_v11 = vadd.f32 %v3699_v36, %v1357_v49 }
 0x337   : > { %v3768_v32 = vadd.f32 %v3699_v36, %v1358_v3  ;;  %v3771_v50 = vadd.f32 %v3699_v36, %v1359_v61  ;;  %v3774_v27 = vadd.f32 %v3699_v36, %v1360_v1  ;;  %v3777_v57 = vadd.f32 %v3699_v36, %v1361_v60 }
 0x338   : > { %v3780_v42 = vadd.f32 %v3699_v36, %v1362_v4  ;;  %v3783_v0 = vadd.f32 %v3699_v36, %v1363_v59  ;;  %v3786_v9 = vadd.f32 %v3699_v36, %v1364_v63  ;;  %v3789_v5 = vadd.f32 %v3699_v36, %v1365_v21 }
 0x339   : > { %v3792_v49 = vadd.f32 %v3699_v36, %v1366_v19  ;;  %v1422_v3 = vadd.f32 %v3699_v36, %v1368_v12  ;;  %v1423_v61 = vadd.f32 %v3699_v36, %v1369_v22  ;;  %v1424_v1 = vadd.f32 %v3699_v36, %v1370_v48 }
 0x33a   : > { %4322 = vst [vmem:[#allocation22_spill] sm:$0xff] %v3789_v5  ;;  %v1425_v60 = vadd.f32 %v3699_v36, %v1371_v62  ;;  %v3799_v4 = vadd.f32 %v3699_v36, %v1372_v41  ;;  %v3802_v59 = vadd.f32 %v3699_v36, %v1373_v51  ;;  %v3805_v63 = vadd.f32 %v3699_v36, %v1374_v26  ;;  %v4333_v5 = vld [vmem:[#allocation7_spill] sm:$0xff] }
 0x33b   : > { %4323 = vst [vmem:[#allocation28_spill] sm:$0xff] %v3792_v49  ;;  %v3808_v21 = vadd.f32 %v3699_v36, %v1375_v38  ;;  %v3811_v19 = vadd.f32 %v3699_v36, %v1376_v17  ;;  %v3814_v12 = vadd.f32 %v3699_v36, %v1377_v31  ;;  %v3817_v22 = vadd.f32 %v3699_v36, %v1378_v10 }
 0x33c   : > { %v3820_v48 = vadd.f32 %v3699_v36, %v1379_v25  ;;  %v3823_v62 = vadd.f32 %v3699_v36, %v1380_v58  ;;  %v3826_v41 = vadd.f32 %v3699_v36, %v1381_v15  ;;  %v1438_v51 = vadd.f32 %v3699_v36, %v1384_v44 }
 0x33d   : > { %v1439_v26 = vadd.f32 %v3699_v36, %v1385_v6  ;;  %v3831_v38 = vadd.f32 %v3699_v36, %v1382_v56  ;;  %v3834_v17 = vadd.f32 %v3699_v36, %v1383_v23  ;;  %v1440_v31 = vadd.f32 %v3699_v36, %v1386_v14 }
 0x33e   : > { %v1441_v10 = vadd.f32 %v3699_v36, %v1387_v40  ;;  %v1442_v25 = vadd.f32 %v3699_v36, %v1388_v46  ;;  %v1443_v58 = vadd.f32 %v3699_v36, %v1389_v29  ;;  %v3841_v15 = vadd.f32 %v3699_v36, %v1390_v28 }
 0x33f   : > { %4324 = vst [vmem:[#allocation25_spill] sm:$0xff] %v3831_v38  ;;  %4325 = vst [vmem:[#allocation29_spill] sm:$0xff] %v3834_v17  ;;  %v3844_v44 = vadd.f32 %v3699_v36, %v1391_v13  ;;  %v3847_v56 = vadd.f32 %v3699_v36, %v1392_v54  ;;  %v3850_v23 = vadd.f32 %v3699_v36, %v1393_v18  ;;  %v1454_v6 = vmax.f32 %v1406_v35, 0.0  ;;  %v4331_v38 = vld [vmem:[#allocation23_spill] sm:$0xff] }
 0x340   : > { %v1455_v14 = vmax.f32 %v1407_v43, 0.0  ;;  %v1470_v24 = vmax.f32 %v1422_v3, 0.0  ;;  %v1471_v40 = vmax.f32 %v1423_v61, 0.0  ;;  %v1486_v20 = vmax.f32 %v1438_v51, 0.0  ;;  %v4326_v3 = vld [vmem:[#allocation2_spill] sm:$0xff] }
 0x341   : > { %v1487_v46 = vmax.f32 %v1439_v26, 0.0  ;;  %v3853_v29 = vadd.f32 %v3699_v36, %v1394_v45  ;;  %v3856_v28 = vadd.f32 %v3699_v36, %v1395_v37  ;;  %v3859_v13 = vadd.f32 %v3699_v36, %v1396_v8  ;;  %v4327_v45 = vld [vmem:[#allocation3_spill] sm:$0xff]  ;;  %v4328_v26 = vld [vmem:[#allocation4_spill] sm:$0xff] }
 0x342   : > { %v1456_v54 = vmax.f32 %v3756_v53, 0.0  ;;  %v1472_v52 = vmax.f32 %v1424_v1, 0.0  ;;  %v1473_v18 = vmax.f32 %v1425_v60, 0.0  ;;  %v1488_v33 = vmax.f32 %v1440_v31, 0.0  ;;  %v4330_v8 = vld [vmem:[#allocation20_spill] sm:$0xff] }
 0x343   : > { %v1489_v55 = vmax.f32 %v1441_v10, 0.0  ;;  %v1457_v35 = vmax.f32 %v3759_v16, 0.0  ;;  %v1458_v43 = vmax.f32 %v3762_v7, 0.0  ;;  %v1502_v61 = vmul.f32 %v1454_v6, %v4326_v3  ;;  %v4332_v10 = vld [vmem:[#allocation5_spill] sm:$0xff] }
 0x344   : > { %v1503_v51 = vmul.f32 %v1455_v14, %v4327_v45  ;;  %v1518_v37 = vmul.f32 %v1470_v24, %v4328_v26  ;;  %v1519_v49 = vmul.f32 %v1471_v40, %v4329_v39  ;;  %v1534_v17 = vmul.f32 %v1486_v20, %v4330_v8  ;;  %v4334_v3 = vld [vmem:[#allocation21_spill] sm:$0xff]  ;;  %v4335_v45 = vld [vmem:[#allocation24_spill] sm:$0xff] }
 0x345   : > { %v1535_v53 = vmul.f32 %v1487_v46, %v4331_v38  ;;  %v1474_v1 = vmax.f32 %v3799_v4, 0.0  ;;  %v1475_v60 = vmax.f32 %v3802_v59, 0.0  ;;  %v1490_v31 = vmax.f32 %v1442_v25, 0.0  ;;  %v2953_v59 = vld [vmem:[%s4215_s5 + $0x10] sm:$0xff]  ;;  %v2954_v46 = vld [vmem:[%s4215_s5 + $0x18] sm:$0xff] }
 0x346   : > { %v1491_v16 = vmax.f32 %v1443_v58, 0.0  ;;  %v1520_v7 = vmul.f32 %v1472_v52, %v4332_v10  ;;  %v1521_v6 = vmul.f32 %v1473_v18, %v4333_v5  ;;  %v1536_v14 = vmul.f32 %v1488_v33, %v4334_v3 }
 0x347   : > { %v1537_v24 = vmul.f32 %v1489_v55, %v4335_v45  ;;  %v1459_v39 = vmax.f32 %v3765_v11, 0.0  ;;  %v1476_v40 = vmax.f32 %v3805_v63, 0.0  ;;  %v1477_v38 = vmax.f32 %v3808_v21, 0.0  ;;  %v4336_v11 = vld [vmem:[#allocation8_spill] sm:$0xff]  ;;  %v4337_v63 = vld [vmem:[#allocation10_spill] sm:$0xff] }
 0x348   : > { %v1614_v20 = vpack.c.bf16 %v1503_v51, %v1502_v61  ;;  %v1492_v4 = vmax.f32 %v3841_v15, 0.0  ;;  %v1504_v25 = vmul.f32 %v2953_v59, %v1456_v54  ;;  %v1622_v58 = vpack.c.bf16 %v1519_v49, %v1518_v37  ;;  %v4338_v21 = vld [vmem:[#allocation26_spill] sm:$0xff] }
 0x349   : > { %v1630_v5 = vpack.c.bf16 %v1535_v53, %v1534_v17  ;;  %v1505_v52 = vmul.f32 %v2954_v46, %v1457_v35  ;;  %v1522_v18 = vmul.f32 %v1474_v1, %v4336_v11  ;;  %v1523_v33 = vmul.f32 %v1475_v60, %v4337_v63  ;;  %v4339_v61 = vld [vmem:[#allocation30_spill] sm:$0xff] }
 0x34a   : > { %v1538_v55 = vmul.f32 %v1490_v31, %v4338_v21  ;;  %v1493_v15 = vmax.f32 %v3844_v44, 0.0  ;;  %v1539_v51 = vmul.f32 %v1491_v16, %v4339_v61  ;;  %2506 = vmatprep.subr.bf16.mxu1 %v1622_v58  ;;  %v1623_v54 = vpack.c.bf16 %v1521_v6, %v1520_v7  ;;  %v2955_v1 = vld [vmem:[%s4215_s5 + $0x20] sm:$0xff]  ;;  %v4341_v31 = vld [vmem:[#allocation11_spill] sm:$0xff] }
 0x34b   : > { %2746 = vmatprep.subr.bf16.mxu0 %v1630_v5  ;;  %v1631_v49 = vpack.c.bf16 %v1537_v24, %v1536_v14  ;;  %v3893_v17 = vadd.f32 %v3699_v36, %v3745_v47  ;;  %v1460_v35 = vmax.f32 %v3768_v32, 0.0  ;;  %v1461_v26 = vmax.f32 %v3771_v50, 0.0  ;;  %2507 = vmatpush3.bf16.msra.mxu1 %v1614_v20  ;;  %v2956_v32 = vld [vmem:[%s4215_s5 + $0x28] sm:$0xff]  ;;  %v2957_v20 = vld [vmem:[%s4215_s5 + $0x30] sm:$0xff]  ;;  %v4345_v59 = vld [vmem:[#allocation14_spill] sm:$0xff] }
 0x34c   : > { %v1478_v37 = vmax.f32 %v3811_v19, 0.0  ;;  %2747 = vmatpush3.bf16.msra.mxu0 %v1630_v5  ;;  %v1479_v44 = vmax.f32 %v3814_v12, 0.0  ;;  %v1494_v8 = vmax.f32 %v3847_v56, 0.0  ;;  %v1495_v53 = vmax.f32 %v3850_v23, 0.0  ;;  %2508 = vmatprep.subr.bf16.mxu1 %v1623_v54  ;;  %v4340_v19 = vld [vmem:[#allocation9_spill] sm:$0xff]  ;;  %v4342_v56 = vld [vmem:[#allocation27_spill] sm:$0xff] }
 0x34d   : > { %v1506_v47 = vmul.f32 %v2955_v1, %v1458_v43  ;;  %2748 = vmatprep.subr.bf16.mxu0 %v1631_v49  ;;  %v1507_v50 = vmul.f32 %v2956_v32, %v1459_v39  ;;  %v1524_v60 = vmul.f32 %v1476_v40, %v4340_v19  ;;  %v1525_v12 = vmul.f32 %v1477_v38, %v4341_v31  ;;  %v4343_v23 = vld [vmem:[#allocation33_spill] sm:$0xff]  ;;  %v2959_v61 = vld [vmem:[%s4215_s5 + $0x40] sm:$0xff]  ;;  %v4349_v54 = vld [vmem:[#allocation15_spill] sm:$0xff] }
 0x34e   : > { %v1615_v16 = vpack.c.bf16 %v1505_v52, %v1504_v25  ;;  %v1540_v10 = vmul.f32 %v1492_v4, %v4342_v56  ;;  %v1541_v7 = vmul.f32 %v1493_v15, %v4343_v23  ;;  %v1624_v6 = vpack.c.bf16 %v1523_v33, %v1522_v18  ;;  %v4352_v1 = vld [vmem:[#allocation22_spill] sm:$0xff]  ;;  %v4353_v32 = vld [vmem:[#allocation25_spill] sm:$0xff] }
 0x34f   : > { %v1632_v3 = vpack.c.bf16 %v1539_v51, %v1538_v55  ;;  %v3913_v43 = vadd.f32 %v3699_v36, %v3748_v2  ;;  %v1462_v14 = vmax.f32 %v3774_v27, 0.0  ;;  %v1463_v45 = vmax.f32 %v3777_v57, 0.0  ;;  %v2958_v27 = vld [vmem:[%s4215_s5 + $0x38] sm:$0xff]  ;;  %v4356_v23 = vld [vmem:[#allocation18_spill] sm:$0xff] }
 0x350   : > { %v1480_v24 = vmax.f32 %v3817_v22, 0.0  ;;  %2509 = vmatpush3.bf16.msra.mxu1 %v1615_v16  ;;  %2749 = vmatpush3.bf16.msra.mxu0 %v1631_v49  ;;  %v1481_v39 = vmax.f32 %v3820_v48, 0.0  ;;  %v1496_v40 = vmax.f32 %v3853_v29, 0.0  ;;  %v1497_v38 = vmax.f32 %v3856_v28, 0.0  ;;  %v4344_v22 = vld [vmem:[#allocation12_spill] sm:$0xff]  ;;  %v4347_v28 = vld [vmem:[#allocation35_spill] sm:$0xff] }
 0x351   : > { %v1508_v2 = vmul.f32 %v2957_v20, %v1460_v35  ;;  %2510 = vmatprep.subr.bf16.mxu1 %v1624_v6  ;;  %2750 = vmatprep.subr.bf16.mxu0 %v1632_v3  ;;  %v1509_v57 = vmul.f32 %v2958_v27, %v1461_v26  ;;  %v1526_v4 = vmul.f32 %v1478_v37, %v4344_v22  ;;  %v4346_v29 = vld [vmem:[#allocation32_spill] sm:$0xff]  ;;  %v1464_v18 = vmax.f32 %v3780_v42, 0.0  ;;  %v4354_v19 = vld [vmem:[#allocation29_spill] sm:$0xff] }
 0x352   : > { %v1527_v48 = vmul.f32 %v1479_v44, %v4345_v59  ;;  %v1616_v25 = vpack.c.bf16 %v1507_v50, %v1506_v47  ;;  %v1542_v58 = vmul.f32 %v1494_v8, %v4346_v29  ;;  %v1543_v5 = vmul.f32 %v1495_v53, %v4347_v28  ;;  %v2961_v16 = vld [vmem:[%s4215_s5 + $0x50] sm:$0xff] }
 0x353   : > { %v1625_v46 = vpack.c.bf16 %v1525_v12, %v1524_v60  ;;  %v1633_v52 = vpack.c.bf16 %v1541_v7, %v1540_v10  ;;  %v1453_v11 = vadd.f32 %v3699_v36, %v3751_v34  ;;  %v1465_v63 = vmax.f32 %v3783_v0, 0.0  ;;  %v2960_v34 = vld [vmem:[%s4215_s5 + $0x48] sm:$0xff]  ;;  %v4348_v0 = vld [vmem:[#allocation13_spill] sm:$0xff] }
 0x354   : > { %v1482_v33 = vmax.f32 %v3823_v62, 0.0  ;;  %2511 = vmatpush3.bf16.msra.mxu1 %v1616_v25  ;;  %2751 = vmatpush3.bf16.msra.mxu0 %v1632_v3  ;;  %v1483_v21 = vmax.f32 %v3826_v41, 0.0  ;;  %v1498_v55 = vmax.f32 %v3859_v13, 0.0  ;;  %v1499_v15 = vmax.f32 %v3893_v17, 0.0  ;;  %v4350_v13 = vld [vmem:[#allocation37_spill] sm:$0xff]  ;;  %v4351_v17 = vld [vmem:[#allocation39_spill] sm:$0xff] }
 0x355   : > { %v1510_v51 = vmul.f32 %v2959_v61, %v1462_v14  ;;  %2512 = vmatprep.subr.bf16.mxu1 %v1625_v46  ;;  %2752 = vmatprep.subr.bf16.mxu0 %v1633_v52  ;;  %v1511_v42 = vmul.f32 %v2960_v34, %v1463_v45  ;;  %v1528_v62 = vmul.f32 %v1480_v24, %v4348_v0  ;;  %v1466_v53 = vmax.f32 %v3786_v9, 0.0  ;;  %v4355_v9 = vld [vmem:[#allocation16_spill] sm:$0xff]  ;;  %v4357_v3 = vld [vmem:[#allocation41_spill] sm:$0xff]  ;;  %v4358_v14 = vld [vmem:[#allocation43_spill] sm:$0xff] }
 0x356   : > { %v1529_v41 = vmul.f32 %v1481_v39, %v4349_v54  ;;  %v1617_v49 = vpack.c.bf16 %v1509_v57, %v1508_v2  ;;  %v1544_v35 = vmul.f32 %v1496_v40, %v4350_v13  ;;  %v1545_v26 = vmul.f32 %v1497_v38, %v4351_v17  ;;  %v4359_v40 = vld [vmem:[#allocation28_spill] sm:$0xff]  ;;  %v2963_v2 = vld [vmem:[%s4215_s5 + $0x60] sm:$0xff]  ;;  %v2964_v57 = vld [vmem:[%s4215_s5 + $0x68] sm:$0xff] }
 0x357   : > { %v1626_v37 = vpack.c.bf16 %v1527_v48, %v1526_v4  ;;  %v1634_v44 = vpack.c.bf16 %v1543_v5, %v1542_v58  ;;  %v1421_v8 = vadd.f32 %v3699_v36, %v3713_v30  ;;  %v1467_v47 = vmax.f32 %v4352_v1, 0.0  ;;  %v2962_v36 = vld [vmem:[%s4215_s5 + $0x58] sm:$0xff]  ;;  %v4361_v48 = vld [vmem:[#allocation19_spill] sm:$0xff]  ;;  %v4362_v58 = vld [vmem:[#allocation44_spill] sm:$0xff] }
 0x358   : > { %v1484_v50 = vmax.f32 %v4353_v32, 0.0  ;;  %2513 = vmatpush3.bf16.msra.mxu1 %v1617_v49  ;;  %2753 = vmatpush3.bf16.msra.mxu0 %v1633_v52  ;;  %v1485_v60 = vmax.f32 %v4354_v19, 0.0  ;;  %v1500_v31 = vmax.f32 %v3913_v43, 0.0  ;;  %v1501_v12 = vmax.f32 %v1453_v11, 0.0  ;;  %v4360_v4 = vld [vmem:[#allocation17_spill] sm:$0xff] }
 0x359   : > { %v1512_v56 = vmul.f32 %v2961_v16, %v1464_v18  ;;  %2514 = vmatprep.subr.bf16.mxu1 %v1626_v37  ;;  %2754 = vmatprep.subr.bf16.mxu0 %v1634_v44  ;;  %v1513_v30 = vmul.f32 %v2962_v36, %v1465_v63  ;;  %v1530_v10 = vmul.f32 %v1482_v33, %v4355_v9  ;;  %v1468_v38 = vmax.f32 %v4359_v40, 0.0  ;;  %v4363_v5 = vld [vmem:[#allocation45_spill] sm:$0xff]  ;;  %v2965_v18 = vld [vmem:[%s4215_s5 + $0x70] sm:$0xff]  ;;  %v2887_v34 = vld [vmem:[%s4219_s9] ss:$12 sps:$4 sm:$0xff]  }
 0x35a   : > { %v1531_v7 = vmul.f32 %v1483_v21, %v4356_v23  ;;  %v1618_v6 = vpack.c.bf16 %v1511_v42, %v1510_v51  ;;  %v1546_v43 = vmul.f32 %v1498_v55, %v4357_v3  ;;  %v1547_v45 = vmul.f32 %v1499_v15, %v4358_v14  ;;  %v2966_v33 = vld [vmem:[%s4215_s5 + $0x78] sm:$0xff]  ;;  %v2891_v42 = vld [vmem:[%s4219_s9 + $0x20] ss:$12 sps:$4 sm:$0xff]   ;;  %v2906_v13 = vld [vmem:[%s4219_s9 + $0x68] ss:$12 sps:$4 sm:$0xff]  }
 0x35b   : > { %v1627_v24 = vpack.c.bf16 %v1529_v41, %v1528_v62  ;;  %v1635_v39 = vpack.c.bf16 %v1545_v26, %v1544_v35  ;;  %v1469_v20 = vmax.f32 %v1421_v8, 0.0  ;;  %v1514_v27 = vmul.f32 %v2963_v2, %v1466_v53  ;;  %v2892_v0 = vld [vmem:[%s4219_s9 + $0x1c] ss:$12 sps:$4 sm:$0xff]   ;;  %v2898_v62 = vld [vmem:[%s4219_s9 + $0x38] ss:$12 sps:$4 sm:$0xff]  }
 0x35c   : > { %2515 = vmatpush3.bf16.msra.mxu1 %v1618_v6  ;;  %2755 = vmatpush3.bf16.msra.mxu0 %v1634_v44  ;;  %v1515_v22 = vmul.f32 %v2964_v57, %v1467_v47  ;;  %v1532_v59 = vmul.f32 %v1484_v50, %v4360_v4  ;;  %v1533_v25 = vmul.f32 %v1485_v60, %v4361_v48  ;;  %v2894_v54 = vld [vmem:[%s4219_s9 + $0x18] ss:$12 sps:$4 sm:$0xff]   ;;  %v2899_v41 = vld [vmem:[%s4219_s9 + $0x50] ss:$12 sps:$4 sm:$0xff]   ;;  %v2895_v49 = vld [vmem:[%s4219_s9 + $0x34] ss:$12 sps:$4 sm:$0xff]  }
 0x35d   : > { %2516 = vmatprep.subr.bf16.mxu1 %v1627_v24  ;;  %2756 = vmatprep.subr.bf16.mxu0 %v1635_v39  ;;  %v1619_v29 = vpack.c.bf16 %v1513_v30, %v1512_v56  ;;  %v1548_v28 = vmul.f32 %v1500_v31, %v4362_v58  ;;  %v1549_v46 = vmul.f32 %v1501_v12, %v4363_v5  ;;  %v2897_v35 = vld [vmem:[%s4219_s9 + $0x30] ss:$12 sps:$4 sm:$0xff]   ;;  %v2907_v17 = vld [vmem:[%s4219_s9 + $0x80] ss:$12 sps:$4 sm:$0xff]   ;;  %v2914_v37 = vld [vmem:[%s4219_s9 + $0x98] ss:$12 sps:$4 sm:$0xff]  }
 0x35e   : > { %v1628_v52 = vpack.c.bf16 %v1531_v7, %v1530_v10  ;;  %v1636_v11 = vpack.c.bf16 %v1547_v45, %v1546_v43  ;;  %v1516_v63 = vmul.f32 %v2965_v18, %v1468_v38  ;;  %v1517_v21 = vmul.f32 %v2966_v33, %v1469_v20  ;;  %v2900_v26 = vld [vmem:[%s4219_s9 + $0x4c] ss:$12 sps:$4 sm:$0xff]   ;;  %v2902_v44 = vld [vmem:[%s4219_s9 + $0x48] ss:$12 sps:$4 sm:$0xff]   ;;  %v2915_v8 = vld [vmem:[%s4219_s9 + $0xb0] ss:$12 sps:$4 sm:$0xff]  }
 0x35f   : > { %v1620_v55 = vpack.c.bf16 %v1515_v22, %v1514_v27  ;;  %v1629_v15 = vpack.c.bf16 %v1533_v25, %v1532_v59  ;;  %v1637_v61 = vpack.c.bf16 %v1549_v46, %v1548_v28  ;;  %v2903_v53 = vld [vmem:[%s4219_s9 + $0x64] ss:$12 sps:$4 sm:$0xff]   ;;  %v2922_v1 = vld [vmem:[%s4219_s9 + $0xc8] ss:$12 sps:$4 sm:$0xff]   ;;  %v2905_v47 = vld [vmem:[%s4219_s9 + $0x60] ss:$12 sps:$4 sm:$0xff]  }
 0x360   : > { %2517 = vmatpush3.bf16.msra.mxu1 %v1619_v29  ;;  %2757 = vmatpush3.bf16.msra.mxu0 %v1635_v39  ;;  %v1621_v51 = vpack.c.bf16 %v1517_v21, %v1516_v63  ;;  %v2923_v32 = vld [vmem:[%s4219_s9 + $0xe0] ss:$12 sps:$4 sm:$0xff]   ;;  %v2908_v50 = vld [vmem:[%s4219_s9 + $0x7c] ss:$12 sps:$4 sm:$0xff]   ;;  %v2930_v19 = vld [vmem:[%s4219_s9 + $0xf8] ss:$12 sps:$4 sm:$0xff]  }
 0x361   : > { %2518 = vmatprep.subr.bf16.mxu1 %v1628_v52  ;;  %2758 = vmatprep.subr.bf16.mxu0 %v1636_v11  ;;  %v2910_v60 = vld [vmem:[%s4219_s9 + $0x78] ss:$12 sps:$4 sm:$0xff]   ;;  %v2931_v31 = vld [vmem:[%s4219_s9 + $0x110] ss:$12 sps:$4 sm:$0xff]   ;;  %v2911_v12 = vld [vmem:[%s4219_s9 + $0x94] ss:$12 sps:$4 sm:$0xff]  }
 0x362   : > { %v2938_v16 = vld [vmem:[%s4219_s9 + $0x128] ss:$12 sps:$4 sm:$0xff]   ;;  %v2913_v56 = vld [vmem:[%s4219_s9 + $0x90] ss:$12 sps:$4 sm:$0xff]   ;;  %v2939_v36 = vld [vmem:[%s4219_s9 + $0x140] ss:$12 sps:$4 sm:$0xff]  }
 0x363   : > { %v2916_v30 = vld [vmem:[%s4219_s9 + $0xac] ss:$12 sps:$4 sm:$0xff]   ;;  %v2918_v10 = vld [vmem:[%s4219_s9 + $0xa8] ss:$12 sps:$4 sm:$0xff]   ;;  %v2947_v23 = vld [vmem:[%s4219_s9 + $0x170] ss:$12 sps:$4 sm:$0xff]  }
 0x364   : > { %2519 = vmatpush3.bf16.msra.mxu1 %v1620_v55  ;;  %2759 = vmatpush3.bf16.msra.mxu0 %v1636_v11  ;;  %v2946_v9 = vld [vmem:[%s4219_s9 + $0x158] ss:$12 sps:$4 sm:$0xff]   ;;  %v2921_v6 = vld [vmem:[%s4219_s9 + $0xc0] ss:$12 sps:$4 sm:$0xff]   ;;  %v2924_v3 = vld [vmem:[%s4219_s9 + $0xdc] ss:$12 sps:$4 sm:$0xff]  }
 0x365   : > { %2520 = vmatprep.subr.bf16.mxu1 %v1629_v15  ;;  %2760 = vmatprep.subr.bf16.mxu0 %v1637_v61  ;;  %v2919_v7 = vld [vmem:[%s4219_s9 + $0xc4] ss:$12 sps:$4 sm:$0xff]   ;;  %v2927_v14 = vld [vmem:[%s4219_s9 + $0xf4] ss:$12 sps:$4 sm:$0xff]   ;;  %v2932_v24 = vld [vmem:[%s4219_s9 + $0x10c] ss:$12 sps:$4 sm:$0xff]  }
 0x366   : > { %v2926_v43 = vld [vmem:[%s4219_s9 + $0xd8] ss:$12 sps:$4 sm:$0xff]   ;;  %v2929_v45 = vld [vmem:[%s4219_s9 + $0xf0] ss:$12 sps:$4 sm:$0xff]   ;;  %v2934_v39 = vld [vmem:[%s4219_s9 + $0x108] ss:$12 sps:$4 sm:$0xff]  }
 0x367   : > { %v2935_v40 = vld [vmem:[%s4219_s9 + $0x124] ss:$12 sps:$4 sm:$0xff]   ;;  %v2937_v38 = vld [vmem:[%s4219_s9 + $0x120] ss:$12 sps:$4 sm:$0xff]   ;;  %v2940_v20 = vld [vmem:[%s4219_s9 + $0x13c] ss:$12 sps:$4 sm:$0xff]  }
 0x368   : > { %2521 = vmatpush3.bf16.msra.mxu1 %v1621_v51  ;;  %2761 = vmatpush3.bf16.msra.mxu0 %v1637_v61  ;;  %v2942_v2 = vld [vmem:[%s4219_s9 + $0x138] ss:$12 sps:$4 sm:$0xff]   ;;  %v2943_v27 = vld [vmem:[%s4219_s9 + $0x154] ss:$12 sps:$4 sm:$0xff]   ;;  %v2945_v57 = vld [vmem:[%s4219_s9 + $0x150] ss:$12 sps:$4 sm:$0xff]  }
 0x369   : > { %v2948_v22 = vld [vmem:[%s4219_s9 + $0x16c] ss:$12 sps:$4 sm:$0xff]   ;;  %v2950_v4 = vld [vmem:[%s4219_s9 + $0x168] ss:$12 sps:$4 sm:$0xff]  }
 0x36b   : > { %1927 = vmatmul.mubr.bf16.vlgmr.msra.gmra.mrb[12].mxu1 %v2887_v34  ;;  %2763 = vmatmul.mubr.bf16.vlgmr.msra.gmra.mrb[44].mxu0 %v2891_v42 }
 0x36c   : > { %1934 = vmatprep.mubr.bf16.mxu1 %v2892_v0  ;;  %2766 = vmatprep.mubr.bf16.mxu0 %v2898_v62 }
 0x373   : > { %1935 = vmatmul.mubr.bf16.gmra.mrb[16].mxu1 %v2894_v54  ;;  %2767 = vmatmul.mubr.bf16.gmra.mrb[48].mxu0 %v2899_v41 }
 0x374   : > { %1942 = vmatprep.mubr.bf16.mxu1 %v2895_v49  ;;  %2770 = vmatprep.mubr.bf16.mxu0 %v2906_v13 }
 0x37b   : > { %1943 = vmatmul.mubr.bf16.gmra.mrb[20].mxu1 %v2897_v35  ;;  %2771 = vmatmul.mubr.bf16.gmra.mrb[52].mxu0 %v2907_v17 }
 0x37c   : > { %1950 = vmatprep.mubr.bf16.mxu1 %v2900_v26  ;;  %2774 = vmatprep.mubr.bf16.mxu0 %v2914_v37 }
 0x383   : > { %1951 = vmatmul.mubr.bf16.gmra.mrb[24].mxu1 %v2902_v44  ;;  %2775 = vmatmul.mubr.bf16.gmra.mrb[56].mxu0 %v2915_v8 }
 0x384   : > { %1958 = vmatprep.mubr.bf16.mxu1 %v2903_v53  ;;  %2778 = vmatprep.mubr.bf16.mxu0 %v2922_v1 }
 0x38b   : > { %1959 = vmatmul.mubr.bf16.gmra.mrb[28].mxu1 %v2905_v47  ;;  %2779 = vmatmul.mubr.bf16.gmra.mrb[60].mxu0 %v2923_v32 }
 0x38c   : > { %1966 = vmatprep.mubr.bf16.mxu1 %v2908_v50  ;;  %2782 = vmatprep.mubr.bf16.mxu0 %v2930_v19 }
 0x393   : > { %1967 = vmatmul.mubr.bf16.gmra.mrb[32].mxu1 %v2910_v60  ;;  %2783 = vmatmul.mubr.bf16.gmra.mrb[64].mxu0 %v2931_v31 }
 0x394   : > { %1974 = vmatprep.mubr.bf16.mxu1 %v2911_v12  ;;  %2786 = vmatprep.mubr.bf16.mxu0 %v2938_v16 }
 0x39b   : > { %1975 = vmatmul.mubr.bf16.gmra.mrb[36].mxu1 %v2913_v56  ;;  %2787 = vmatmul.mubr.bf16.gmra.mrb[68].mxu0 %v2939_v36 }
 0x39c   : > { %1982 = vmatprep.mubr.bf16.mxu1 %v2916_v30  ;;  %2790 = vmatprep.mubr.bf16.mxu0 %v2946_v9 }
 0x3a3   : > { %1983 = vmatmul.mubr.bf16.gmra.mrb[40].mxu1 %v2918_v10  ;;  %2791 = vmatmul.mubr.bf16.gmra.mrb[72].mxu0 %v2947_v23 }
 0x3a4   : > { %1990 = vmatprep.mubr.bf16.mxu1 %v2919_v7 }
 0x3ab   : > { %1991 = vmatmul.mubr.bf16.gmra.mrb[44].mxu1 %v2921_v6 }
 0x3ac   : > { %1998 = vmatprep.mubr.bf16.mxu1 %v2924_v3 }
 0x3b3   : > { %1999 = vmatmul.mubr.bf16.gmra.mrb[48].mxu1 %v2926_v43 }
 0x3b4   : > { %2006 = vmatprep.mubr.bf16.mxu1 %v2927_v14 }
 0x3bb   : > { %2007 = vmatmul.mubr.bf16.gmra.mrb[52].mxu1 %v2929_v45 }
 0x3bc   : > { %2014 = vmatprep.mubr.bf16.mxu1 %v2932_v24 }
 0x3c3   : > { %2015 = vmatmul.mubr.bf16.gmra.mrb[56].mxu1 %v2934_v39 }
 0x3c4   : > { %2022 = vmatprep.mubr.bf16.mxu1 %v2935_v40 }
 0x3cb   : > { %2023 = vmatmul.mubr.bf16.gmra.mrb[60].mxu1 %v2937_v38 }
 0x3cc   : > { %2030 = vmatprep.mubr.bf16.mxu1 %v2940_v20 }
 0x3d3   : > { %2031 = vmatmul.mubr.bf16.gmra.mrb[64].mxu1 %v2942_v2 }
 0x3d4   : > { %2038 = vmatprep.mubr.bf16.mxu1 %v2943_v27 }
 0x3db   : > { %2039 = vmatmul.mubr.bf16.gmra.mrb[68].mxu1 %v2945_v57 }
 0x3dc   : > { %2046 = vmatprep.mubr.bf16.mxu1 %v2948_v22 }
 0x3e3   : > { %2047 = vmatmul.mubr.bf16.gmra.mrb[72].mxu1 %v2950_v4 }
 0x43e   : > { %v2522_v59 = vpop.f32.mrb[12].mxu1  ;;  %v2764_v48 = vpop.f32.mrb[44].mxu0 }
 0x43f   : > { %v2523_v25 = vpop.f32.mrb[13].mxu1  ;;  %v2089_v29 = vpop.f32.mrb[45].mxu0 }
 0x440   : > { %v2524_v58 = vadd.f32 %v2523_v25, %v2522_v59  ;;  %v2525_v28 = vpop.f32.mrb[14].mxu1  ;;  %v2765_v5 = vpop.f32.mrb[46].mxu0 }
 0x441   : > { %v2526_v46 = vpop.f32.mrb[15].mxu1  ;;  %v2092_v52 = vpop.f32.mrb[47].mxu0 }
 0x442   : > { %v2527_v11 = vadd.f32 %v2526_v46, %v2525_v28  ;;  %v2090_v18 = vadd.f32 %v2524_v58, %v2089_v29 }
 0x444   : > { %2216 = vst [vmem:[%s4125_s30] sm:$0xff] %v2090_v18  ;;  %v2093_v63 = vadd.f32 %v2527_v11, %v2092_v52 }
 0x446   : > { %2217 = vst [vmem:[%s4125_s30 + $0x8] sm:$0xff] %v2093_v63  ;;  %v2528_v33 = vpop.f32.mrb[16].mxu1  ;;  %v2768_v21 = vpop.f32.mrb[48].mxu0 }
 0x447   : > { %v2529_v55 = vpop.f32.mrb[17].mxu1  ;;  %v2105_v15 = vpop.f32.mrb[49].mxu0 }
 0x448   : > { %v2530_v61 = vadd.f32 %v2529_v55, %v2528_v33  ;;  %v2531_v51 = vpop.f32.mrb[18].mxu1  ;;  %v2769_v34 = vpop.f32.mrb[50].mxu0 }
 0x449   : > { %v2532_v42 = vpop.f32.mrb[19].mxu1  ;;  %v2108_v0 = vpop.f32.mrb[51].mxu0 }
 0x44a   : > { %v2098_v62 = vadd.f32 %v2764_v48, %v2530_v61  ;;  %v2533_v54 = vadd.f32 %v2532_v42, %v2531_v51 }
 0x44c   : > { %2218 = vst [vmem:[%s4125_s30 + $0x10] sm:$0xff] %v2098_v62  ;;  %v2101_v41 = vadd.f32 %v2765_v5, %v2533_v54 }
 0x44e   : > { %2219 = vst [vmem:[%s4125_s30 + $0x18] sm:$0xff] %v2101_v41  ;;  %v2534_v49 = vpop.f32.mrb[20].mxu1  ;;  %v2772_v13 = vpop.f32.mrb[52].mxu0 }
 0x44f   : > { %v2535_v35 = vpop.f32.mrb[21].mxu1  ;;  %v2121_v17 = vpop.f32.mrb[53].mxu0 }
 0x450   : > { %v2536_v26 = vadd.f32 %v2535_v35, %v2534_v49  ;;  %v2537_v37 = vpop.f32.mrb[22].mxu1  ;;  %v2773_v44 = vpop.f32.mrb[54].mxu0 }
 0x451   : > { %v2538_v8 = vpop.f32.mrb[23].mxu1  ;;  %v2124_v53 = vpop.f32.mrb[55].mxu0 }
 0x452   : > { %v2539_v1 = vadd.f32 %v2538_v8, %v2537_v37  ;;  %v2106_v47 = vadd.f32 %v2536_v26, %v2105_v15 }
 0x454   : > { %2220 = vst [vmem:[%s4125_s30 + $0x20] sm:$0xff] %v2106_v47  ;;  %v2109_v32 = vadd.f32 %v2539_v1, %v2108_v0 }
 0x456   : > { %2221 = vst [vmem:[%s4125_s30 + $0x28] sm:$0xff] %v2109_v32  ;;  %v2540_v50 = vpop.f32.mrb[24].mxu1  ;;  %v4133_v19 = vpop.f32.mrb[56].mxu0 }
 0x457   : > { %v2541_v60 = vpop.f32.mrb[25].mxu1  ;;  %v2137_v31 = vpop.f32.mrb[57].mxu0 }
 0x458   : > { %v2542_v12 = vadd.f32 %v2541_v60, %v2540_v50  ;;  %v2543_v16 = vpop.f32.mrb[26].mxu1  ;;  %v2777_v56 = vpop.f32.mrb[58].mxu0 }
 0x459   : > { %v2544_v36 = vpop.f32.mrb[27].mxu1  ;;  %v2140_v30 = vpop.f32.mrb[59].mxu0 }
 0x45a   : > { %v2114_v9 = vadd.f32 %v2768_v21, %v2542_v12  ;;  %v2545_v10 = vadd.f32 %v2544_v36, %v2543_v16 }
 0x45c   : > { %2222 = vst [vmem:[%s4125_s30 + $0x30] sm:$0xff] %v2114_v9  ;;  %v2117_v23 = vadd.f32 %v2769_v34, %v2545_v10 }
 0x45e   : > { %2223 = vst [vmem:[%s4125_s30 + $0x38] sm:$0xff] %v2117_v23  ;;  %v2546_v7 = vpop.f32.mrb[28].mxu1  ;;  %v4137_v6 = vpop.f32.mrb[60].mxu0 }
 0x45f   : > { %v2547_v3 = vpop.f32.mrb[29].mxu1  ;;  %v2153_v43 = vpop.f32.mrb[61].mxu0 }
 0x460   : > { %v2548_v14 = vadd.f32 %v2547_v3, %v2546_v7  ;;  %v2549_v45 = vpop.f32.mrb[30].mxu1  ;;  %v4139_v24 = vpop.f32.mrb[62].mxu0 }
 0x461   : > { %v2550_v39 = vpop.f32.mrb[31].mxu1  ;;  %v2156_v40 = vpop.f32.mrb[63].mxu0 }
 0x462   : > { %v2551_v38 = vadd.f32 %v2550_v39, %v2549_v45  ;;  %v2122_v20 = vadd.f32 %v2548_v14, %v2121_v17 }
 0x464   : > { %2224 = vst [vmem:[%s4125_s30 + $0x40] sm:$0xff] %v2122_v20  ;;  %v2125_v2 = vadd.f32 %v2551_v38, %v2124_v53 }
 0x466   : > { %2225 = vst [vmem:[%s4125_s30 + $0x48] sm:$0xff] %v2125_v2  ;;  %v2552_v27 = vpop.f32.mrb[32].mxu1  ;;  %v4143_v57 = vpop.f32.mrb[64].mxu0 }
 0x467   : > { %v2553_v22 = vpop.f32.mrb[33].mxu1  ;;  %v4145_v4 = vpop.f32.mrb[65].mxu0 }
 0x468   : > { %v2554_v59 = vadd.f32 %v2553_v22, %v2552_v27  ;;  %v2555_v48 = vpop.f32.mrb[34].mxu1  ;;  %v4147_v25 = vpop.f32.mrb[66].mxu0 }
 0x469   : > { %v2556_v29 = vpop.f32.mrb[35].mxu1  ;;  %v2172_v58 = vpop.f32.mrb[67].mxu0 }
 0x46a   : > { %v2130_v28 = vadd.f32 %v2772_v13, %v2554_v59  ;;  %v2557_v5 = vadd.f32 %v2556_v29, %v2555_v48 }
 0x46c   : > { %2226 = vst [vmem:[%s4125_s30 + $0x50] sm:$0xff] %v2130_v28  ;;  %v2133_v46 = vadd.f32 %v2773_v44, %v2557_v5 }
 0x46e   : > { %2227 = vst [vmem:[%s4125_s30 + $0x58] sm:$0xff] %v2133_v46  ;;  %v2558_v52 = vpop.f32.mrb[36].mxu1  ;;  %v4151_v11 = vpop.f32.mrb[68].mxu0 }
 0x46f   : > { %v2559_v18 = vpop.f32.mrb[37].mxu1  ;;  %v4153_v63 = vpop.f32.mrb[69].mxu0 }
 0x470   : > { %v2560_v33 = vadd.f32 %v2559_v18, %v2558_v52  ;;  %v2561_v21 = vpop.f32.mrb[38].mxu1  ;;  %v4155_v55 = vpop.f32.mrb[70].mxu0 }
 0x471   : > { %v2562_v15 = vpop.f32.mrb[39].mxu1  ;;  %v4157_v61 = vpop.f32.mrb[71].mxu0 }
 0x472   : > { %v2563_v51 = vadd.f32 %v2562_v15, %v2561_v21  ;;  %v2138_v34 = vadd.f32 %v2560_v33, %v2137_v31 }
 0x474   : > { %2228 = vst [vmem:[%s4125_s30 + $0x60] sm:$0xff] %v2138_v34  ;;  %v2141_v42 = vadd.f32 %v2563_v51, %v2140_v30 }
 0x476   : > { %2229 = vst [vmem:[%s4125_s30 + $0x68] sm:$0xff] %v2141_v42  ;;  %v2564_v0 = vpop.f32.mrb[40].mxu1  ;;  %v4161_v62 = vpop.f32.mrb[72].mxu0 }
 0x477   : > { %v2565_v54 = vpop.f32.mrb[41].mxu1  ;;  %v4163_v41 = vpop.f32.mrb[73].mxu0 }
 0x478   : > { %v2566_v49 = vadd.f32 %v2565_v54, %v2564_v0  ;;  %v2567_v13 = vpop.f32.mrb[42].mxu1  ;;  %v4165_v35 = vpop.f32.mrb[74].mxu0 }
 0x479   : > { %v2568_v17 = vpop.f32.mrb[43].mxu1  ;;  %v4167_v26 = vpop.f32.mrb[75].mxu0 }
 0x47a   : > { %v2146_v37 = vadd.f32 %v4133_v19, %v2566_v49  ;;  %v2569_v44 = vadd.f32 %v2568_v17, %v2567_v13 }
 0x47c   : > { %2230 = vst [vmem:[%s4125_s30 + $0x70] sm:$0xff] %v2146_v37  ;;  %v2149_v8 = vadd.f32 %v2777_v56, %v2569_v44 }
 0x47e   : > { %2231 = vst [vmem:[%s4125_s30 + $0x78] sm:$0xff] %v2149_v8  ;;  %v2570_v53 = vpop.f32.mrb[44].mxu1 }
 0x47f   : > { %v2571_v1 = vpop.f32.mrb[45].mxu1 }
 0x480   : > { %v2572_v47 = vadd.f32 %v2571_v1, %v2570_v53  ;;  %v2573_v32 = vpop.f32.mrb[46].mxu1 }
 0x481   : > { %v2574_v50 = vpop.f32.mrb[47].mxu1 }
 0x482   : > { %v2575_v60 = vadd.f32 %v2574_v50, %v2573_v32  ;;  %v2154_v31 = vadd.f32 %v2572_v47, %v2153_v43 }
 0x484   : > { %2232 = vst [vmem:[%s4125_s30 + $0x80] sm:$0xff] %v2154_v31  ;;  %v2157_v12 = vadd.f32 %v2575_v60, %v2156_v40 }
 0x486   : > { %2233 = vst [vmem:[%s4125_s30 + $0x88] sm:$0xff] %v2157_v12  ;;  %v2576_v16 = vpop.f32.mrb[48].mxu1 }
 0x487   : > { %v2577_v36 = vpop.f32.mrb[49].mxu1 }
 0x488   : > { %v2578_v19 = vadd.f32 %v2577_v36, %v2576_v16  ;;  %v2579_v30 = vpop.f32.mrb[50].mxu1 }
 0x489   : > { %v2580_v56 = vpop.f32.mrb[51].mxu1 }
 0x48a   : > { %v2162_v9 = vadd.f32 %v4137_v6, %v2578_v19  ;;  %v2581_v10 = vadd.f32 %v2580_v56, %v2579_v30 }
 0x48c   : > { %2234 = vst [vmem:[%s4125_s30 + $0x90] sm:$0xff] %v2162_v9  ;;  %v2165_v23 = vadd.f32 %v4139_v24, %v2581_v10 }
 0x48e   : > { %2235 = vst [vmem:[%s4125_s30 + $0x98] sm:$0xff] %v2165_v23  ;;  %v2582_v7 = vpop.f32.mrb[52].mxu1 }
 0x48f   : > { %v2583_v3 = vpop.f32.mrb[53].mxu1 }
 0x490   : > { %v2584_v43 = vadd.f32 %v2583_v3, %v2582_v7  ;;  %v2585_v14 = vpop.f32.mrb[54].mxu1 }
 0x491   : > { %v2586_v45 = vpop.f32.mrb[55].mxu1 }
 0x492   : > { %v2587_v39 = vadd.f32 %v2586_v45, %v2585_v14  ;;  %v2170_v40 = vadd.f32 %v2584_v43, %v4145_v4 }
 0x494   : > { %2236 = vst [vmem:[%s4125_s30 + $0xa0] sm:$0xff] %v2170_v40  ;;  %v2173_v38 = vadd.f32 %v2587_v39, %v2172_v58 }
 0x496   : > { %2237 = vst [vmem:[%s4125_s30 + $0xa8] sm:$0xff] %v2173_v38  ;;  %v2588_v20 = vpop.f32.mrb[56].mxu1 }
 0x497   : > { %v2589_v6 = vpop.f32.mrb[57].mxu1 }
 0x498   : > { %v2590_v2 = vadd.f32 %v2589_v6, %v2588_v20  ;;  %v2591_v27 = vpop.f32.mrb[58].mxu1 }
 0x499   : > { %v2592_v24 = vpop.f32.mrb[59].mxu1 }
 0x49a   : > { %v2178_v22 = vadd.f32 %v4143_v57, %v2590_v2  ;;  %v2593_v59 = vadd.f32 %v2592_v24, %v2591_v27 }
 0x49c   : > { %2238 = vst [vmem:[%s4125_s30 + $0xb0] sm:$0xff] %v2178_v22  ;;  %v2181_v48 = vadd.f32 %v4147_v25, %v2593_v59 }
 0x49e   : > { %2239 = vst [vmem:[%s4125_s30 + $0xb8] sm:$0xff] %v2181_v48  ;;  %v2594_v29 = vpop.f32.mrb[60].mxu1 }
 0x49f   : > { %v2595_v28 = vpop.f32.mrb[61].mxu1 }
 0x4a0   : > { %v2596_v4 = vadd.f32 %v2595_v28, %v2594_v29  ;;  %v2597_v58 = vpop.f32.mrb[62].mxu1 }
 0x4a1   : > { %v2598_v5 = vpop.f32.mrb[63].mxu1 }
 0x4a2   : > { %v2599_v46 = vadd.f32 %v2598_v5, %v2597_v58  ;;  %v2186_v52 = vadd.f32 %v2596_v4, %v4153_v63 }
 0x4a4   : > { %2240 = vst [vmem:[%s4125_s30 + $0xc0] sm:$0xff] %v2186_v52  ;;  %v2189_v18 = vadd.f32 %v2599_v46, %v4157_v61 }
 0x4a6   : > { %2241 = vst [vmem:[%s4125_s30 + $0xc8] sm:$0xff] %v2189_v18  ;;  %v2600_v57 = vpop.f32.mrb[64].mxu1 }
 0x4a7   : > { %v2601_v33 = vpop.f32.mrb[65].mxu1 }
 0x4a8   : > { %v2602_v21 = vadd.f32 %v2601_v33, %v2600_v57  ;;  %v2603_v25 = vpop.f32.mrb[66].mxu1 }
 0x4a9   : > { %v2604_v15 = vpop.f32.mrb[67].mxu1 }
 0x4aa   : > { %v2194_v51 = vadd.f32 %v4151_v11, %v2602_v21  ;;  %v2605_v34 = vadd.f32 %v2604_v15, %v2603_v25 }
 0x4ac   : > { %2242 = vst [vmem:[%s4125_s30 + $0xd0] sm:$0xff] %v2194_v51  ;;  %v2197_v42 = vadd.f32 %v4155_v55, %v2605_v34 }
 0x4ae   : > { %2243 = vst [vmem:[%s4125_s30 + $0xd8] sm:$0xff] %v2197_v42  ;;  %v2606_v0 = vpop.f32.mrb[68].mxu1 }
 0x4af   : > { %v2607_v63 = vpop.f32.mrb[69].mxu1 }
 0x4b0   : > { %v2608_v54 = vadd.f32 %v2607_v63, %v2606_v0  ;;  %v2609_v61 = vpop.f32.mrb[70].mxu1 }
 0x4b1   : > { %v2610_v49 = vpop.f32.mrb[71].mxu1 }
 0x4b2   : > { %v2611_v13 = vadd.f32 %v2610_v49, %v2609_v61  ;;  %v2202_v17 = vadd.f32 %v2608_v54, %v4163_v41 }
 0x4b4   : > { %2244 = vst [vmem:[%s4125_s30 + $0xe0] sm:$0xff] %v2202_v17  ;;  %v2205_v37 = vadd.f32 %v2611_v13, %v4167_v26 }
 0x4b6   : > { %2245 = vst [vmem:[%s4125_s30 + $0xe8] sm:$0xff] %v2205_v37  ;;  %v2612_v11 = vpop.f32.mrb[72].mxu1 }
 0x4b7   : > { %v2613_v44 = vpop.f32.mrb[73].mxu1 }
 0x4b8   : > { %v2614_v8 = vadd.f32 %v2613_v44, %v2612_v11  ;;  %v2615_v53 = vpop.f32.mrb[74].mxu1 }
 0x4b9   : > { %v2616_v55 = vpop.f32.mrb[75].mxu1 }
 0x4ba   : > { %v2210_v1 = vadd.f32 %v4161_v62, %v2614_v8  ;;  %v2617_v47 = vadd.f32 %v2616_v55, %v2615_v53 }
 0x4bc   : > { %2246 = vst [vmem:[%s4125_s30 + $0xf0] sm:$0xff] %v2210_v1  ;;  %v2213_v32 = vadd.f32 %v4165_v35, %v2617_v47 }
 0x4be   : > { %2247 = vst [vmem:[%s4125_s30 + $0xf8] sm:$0xff] %v2213_v32 }
 0x4bf PF: > { %s20_s15 = sadd.s32 1, %s2989_s15   ;;  %s4364_s13 = smov %s2985_s14 }
 0x4c0   : > { %p17_p5 = scmp.ge.s32.totalorder %s20_s15, 4   ;;  %s4365_s14 = smov %s4367_s16 }
 0x4c2   :  { %19 = sbr.rel (!%p17_p5) target bundleno = 2 (0x2), region = 93 }

</bundles_post_ra>
